<compile_context>
chip_gen: v6e
topology: v6e:2x2x1
jax: 0.10.0
libtpu: 0.0.40
codegen_flags: <defaults>
</compile_context>

<pallas_src>
import jax
import jax.numpy as jnp
from jax.experimental import pallas as pl
from jax.experimental.pallas import tpu as pltpu


_SMALL_BYTES = 1 << 18               # <= 256 KiB: plain XLA beats pallas_call dispatch
_BLOCK_BYTE_CAP = 2 * 1024 * 1024    # ~2 MiB blocks: near HBM roofline, v5e-safe
_VMEM_LIMIT_BYTES = 32 * 1024 * 1024  # explicit scoped-VMEM budget (4 bufs + slack)


def _scale_kernel(scale_ref, inp_ref, out_ref):
    """out = scale * inp (elementwise); scale lives in SMEM via scalar prefetch."""
    x = inp_ref[...]
    if jnp.issubdtype(x.dtype, jnp.floating):
        # Native multiply in the input dtype (bf16/f16/f32): no f32 round trip.
        s = scale_ref[0].astype(x.dtype)
        out_ref[...] = (s * x).astype(out_ref.dtype)
    else:
        # Integer input: promote to f32 like torch's float-scalar * int-tensor.
        # TODO(synk): exact torch type-promotion for exotic integer dtypes not replicated.
        out_ref[...] = (scale_ref[0] * x.astype(jnp.float32)).astype(out_ref.dtype)


def _sublane_align(itemsize):
    # f32 tiles (8,128); packed dtypes tile the sublane axis in pairs/quads.
    return 8 * max(1, 4 // itemsize)


def _choose_tiles(n, m, itemsize):
    """Pick a lane-dense, sublane-aligned block <= _BLOCK_BYTE_CAP (m % 128 == 0)."""
    align = _sublane_align(itemsize)
    if m * align * itemsize <= _BLOCK_BYTE_CAP:
        tn = m  # full rows: lane-maximal, long unmasked stores, fewest grid steps
    else:
        tn = max(128, ((_BLOCK_BYTE_CAP // (align * itemsize)) // 128) * 128)
    rows_fit = max(align, ((_BLOCK_BYTE_CAP // (tn * itemsize)) // align) * align)
    if n <= align:
        tm = n  # short sublane dim: use the full extent (allowed by (8,128)-or-full rule)
    else:
        n_rounded = ((n + align - 1) // align) * align
        tm = min(rows_fit, n_rounded)
    return tm, tn


def _scale_2d(scale, x, out_dtype):
    """Pallas scalar*matrix over an (N, M) array with M % 128 == 0."""
    n, m = x.shape
    itemsize = jnp.dtype(x.dtype).itemsize
    tm, tn = _choose_tiles(n, m, itemsize)

    if tn == m:
        # Full-row strips -> collapse to a 1-D row grid.
        grid = (pl.cdiv(n, tm),)
        in_specs = [pl.BlockSpec((tm, tn), lambda i, s_ref: (i, 0))]
        out_specs = pl.BlockSpec((tm, tn), lambda i, s_ref: (i, 0))
        dims = ("parallel",)
    else:
        grid = (pl.cdiv(n, tm), pl.cdiv(m, tn))
        in_specs = [pl.BlockSpec((tm, tn), lambda i, j, s_ref: (i, j))]
        out_specs = pl.BlockSpec((tm, tn), lambda i, j, s_ref: (i, j))
        dims = ("parallel", "parallel")

    grid_spec = pltpu.PrefetchScalarGridSpec(
        num_scalar_prefetch=1,
        grid=grid,
        in_specs=in_specs,
        out_specs=out_specs,
    )
    return pl.pallas_call(
        _scale_kernel,
        out_shape=jax.ShapeDtypeStruct((n, m), out_dtype),
        grid_spec=grid_spec,
        compiler_params=pltpu.CompilerParams(
            dimension_semantics=dims,
            vmem_limit_bytes=_VMEM_LIMIT_BYTES,
        ),
    )(scale, x)


def model_forward(x1, x2, inp):
    # v2 = (x1 @ x2)[0, 0]: only row 0 of x1 and column 0 of x2 contribute, so
    # compute the scalar as a tiny dot in the wrapper (free in XLA), f32 accum.
    scale = jnp.dot(
        x1[0, :].astype(jnp.float32),
        x2[:, 0].astype(jnp.float32),
        preferred_element_type=jnp.float32,
    ).reshape((1,))

    # TODO(synk): torch.mm(v2, inp) with a 0-dim v2 has no valid torch meaning;
    # implemented as scalar * matrix.
    out_dtype = inp.dtype if jnp.issubdtype(inp.dtype, jnp.floating) else jnp.float32

    n, m = inp.shape
    itemsize = jnp.dtype(inp.dtype).itemsize

    # Tiny inputs (the module's nominal 3x3): pallas_call dispatch dominates,
    # let XLA fuse the scalar multiply.
    if n * m * itemsize <= _SMALL_BYTES:
        return (scale[0] * inp.astype(jnp.float32)).astype(out_dtype)

    if m % 128 == 0:
        return _scale_2d(scale, inp, out_dtype)

    # Lane-dense reshape: a contiguous row-major reshape is free in XLA and
    # turns a narrow / ragged last dim into full 128-lane stores.
    for lanes in (2048, 1024, 512, 256, 128):
        if (n * m) % lanes == 0:
            xr = inp.reshape(n * m // lanes, lanes)
            out = _scale_2d(scale, xr, out_dtype)
            return out.reshape(n, m)

    # Last resort: pad the lane dim up to a multiple of 128, run, slice back.
    m_pad = ((m + 127) // 128) * 128
    xp = jnp.pad(inp, ((0, 0), (0, m_pad - m)))
    out = _scale_2d(scale, xp, out_dtype)
    return out[:, :m]


if __name__ == "__main__":
    key = jax.random.PRNGKey(0)
    k1, k2, k3, k4, k5, k6 = jax.random.split(key, 6)

    # Nominal module shapes (3x3): small-input fast path.
    x1 = jax.random.normal(k1, (3, 3), dtype=jnp.float32)
    x2 = jax.random.normal(k2, (3, 3), dtype=jnp.float32)
    inp = jax.random.normal(k3, (3, 3), dtype=jnp.float32)
    out = model_forward(x1, x2, inp)
    jax.block_until_ready(out)
    ref = (x1 @ x2)[0, 0] * inp
    assert jnp.allclose(out, ref, atol=1e-5, rtol=1e-5), (out, ref)

    # Aligned case, multiple row strips: full-row tiles + 1-D pipelined grid.
    inp_big = jax.random.normal(k4, (1536, 640), dtype=jnp.float32)
    out_big = model_forward(x1, x2, inp_big)
    jax.block_until_ready(out_big)
    ref_big = (x1 @ x2)[0, 0] * inp_big
    assert jnp.allclose(out_big, ref_big, atol=1e-5, rtol=1e-5)

    # Ragged last dim (not a multiple of 128): pad-to-128 fallback path.
    inp_rag = jax.random.normal(k5, (520, 200), dtype=jnp.float32)
    out_rag = model_forward(x1, x2, inp_rag)
    jax.block_until_ready(out_rag)
    ref_rag = (x1 @ x2)[0, 0] * inp_rag
    assert jnp.allclose(out_rag, ref_rag, atol=1e-5, rtol=1e-5)

    # bf16: native bf16 multiply in the kernel (no f32 round trip).
    inp_bf16 = jax.random.normal(k6, (384, 512), dtype=jnp.bfloat16)
    out_bf16 = model_forward(x1, x2, inp_bf16)
    jax.block_until_ready(out_bf16)
    ref_bf16 = ((x1 @ x2)[0, 0] * inp_bf16.astype(jnp.float32)).astype(jnp.bfloat16)
    assert jnp.allclose(out_bf16.astype(jnp.float32), ref_bf16.astype(jnp.float32),
                        atol=3e-2, rtol=3e-2)

    print("KERNEL_OK")
</pallas_src>

<mosaic_0001>
module attributes {stable_mosaic.version = 11 : i64} {
  func.func @_scale_kernel(%arg0: i32, %arg1: memref<1xf32, #tpu.memory_space<smem>>, %arg2: memref<816x640xf32, #tpu.memory_space<vmem>>, %arg3: memref<816x640xf32, #tpu.memory_space<vmem>>) attributes {dimension_semantics = [#tpu.dimension_semantics<parallel>], iteration_bounds = array<i64: 2>, scalar_prefetch = 1 : i64, scratch_operands = 0 : i64, tpu.core_type = #tpu.core_type<tc>, window_params = [{transform_indices = @transform_0, window_bounds = array<i64: 816, 640>}, {transform_indices = @transform_1, window_bounds = array<i64: 816, 640>}]} {
    %c0 = arith.constant 0 : index
    %c0_0 = arith.constant 0 : index
    %0 = vector.load %arg2[%c0, %c0_0] : memref<816x640xf32, #tpu.memory_space<vmem>>, vector<816x640xf32>
    %c0_1 = arith.constant 0 : index
    %1 = memref.load %arg1[%c0_1] : memref<1xf32, #tpu.memory_space<smem>>
    %2 = vector.broadcast %1 : f32 to vector<816x640xf32>
    %3 = arith.mulf %2, %0 : vector<816x640xf32>
    %c0_2 = arith.constant 0 : index
    %c0_3 = arith.constant 0 : index
    %4 = vector.load %arg3[%c0_2, %c0_3] : memref<816x640xf32, #tpu.memory_space<vmem>>, vector<816x640xf32>
    tpu.vector_store %arg3[%c0_2, %c0_3], %3 {strides = array<i32>} : memref<816x640xf32, #tpu.memory_space<vmem>>, vector<816x640xf32>,
    return
  }
  func.func @transform_0(%arg0: i32, %arg1: memref<1xf32, #tpu.memory_space<smem>>) -> (i32, i32) {
    %c0_i32 = arith.constant 0 : i32
    %c0_i32_0 = arith.constant 0 : i32
    return %arg0, %c0_i32 : i32, i32
  }
  func.func @transform_1(%arg0: i32, %arg1: memref<1xf32, #tpu.memory_space<smem>>) -> (i32, i32) {
    %c0_i32 = arith.constant 0 : i32
    %c0_i32_0 = arith.constant 0 : i32
    return %arg0, %c0_i32 : i32, i32
  }
}

</mosaic_0001>

<bundles_post_ra>
// kernel: tpu_custom_call.1
= control target key start
LH: loop header
LB: loop body
LE: loop exit
PB: predicated region body
PF: predicated region fallthrough
CT: control target
= control target key end

     0   :  { %s3670_s0 = inlined_call_operand.<no memory space> [shape: f32[1], index: 0, kind: input, shape index: {}]   ;;  %s3671_s1 = inlined_call_operand.hbm [shape: f32[1536,640], index: 1, kind: input, shape index: {}]   ;;  %s3672_s2 = inlined_call_operand.hbm [shape: f32[1536,640], index: 2, kind: output, shape index: {}]  }
   0x1   :  { %7 = sst [smem:[#allocation3]] %s3670_s0 }
   0x2   :  { %8 = vsyncpa [#allocation5], 0 }
   0x3   :  { %10 = vsyncpa [#allocation5 + $0x1], 0 }
   0x4   :  { %11 = vsyncpa [#allocation6], 0 }
   0x5   :  { %13 = vsyncpa [#allocation6 + $0x1], 0  ;;  %s1965_s11 = smov 0   ;;  %s1967_s12 = smov 0  }
   0x6   :  { %s1969_s13 = smov 0   ;;  %s1971_s14 = smov 0  }
   0x7 LB: > { %s1986_s0 = sadd.s32 4294967295, %s1939_s14   ;;  %s1784_s15 = sadd.s32 4294967294, %s1939_s14   ;;  %s1939_s14 = sphi %s1971_s14, %s3682_s14   ;;  %s1935_s13 = sphi %s1969_s13, %s3681_s13   ;;  %s1931_s12 = sphi %s1967_s12, %s3680_s12   ;;  %s1927_s11 = sphi %s1965_s11, %s3679_s11  }
   0x8   : > { %s1990_s16 = sadd.s32 1, %s1939_s14   ;;  %s26_s17 = sadd.s32 1, %s1935_s13 }
   0x9   : > { %s23_s18 = ssub.s32 %s1939_s14, %s1990_s16  ;;  %p33_p0 = scmp.ne.s32.totalorder %s1935_s13, %s1931_s12 }
   0xa   : > { %p24_p1 = scmp.eq.s32.totalorder %s23_s18, 0  ;;  %p34_p2 = scmp.eq.s32.totalorder %s1939_s14, 0 }
   0xb   : > { %p39_p3 = scmp.ne.s32.totalorder %s1931_s12, %s1927_s11  ;;  %p40_p4 = scmp.eq.s32.totalorder %s1986_s0, 0 }
   0xc   : > { %s2002_s19 = scalar_select %p24_p1, %s1935_s13, %s26_s17  }
   0xd   : > { %p35_p5 = por %p34_p2, %p33_p0  ;;  %p2004_p6 = por %p40_p4, %p39_p3 }
   0xe   : > { %p63_p7 = scmp.eq.s32.totalorder %s1986_s0, 1  ;;  %p69_p8 = scmp.eq.s32.totalorder %s1784_s15, 1 }
   0xf   : > { %p3673_p11 = scmp.ge.s32.totalorder %s1939_s14, 2 }
  0x10   : > { %p2009_p9 = por %p63_p7, %p33_p0  ;;  %p2013_p10 = por %p69_p8, %p39_p3 }
  0x11   : > { %85 = sbr.rel (%p3673_p11) target bundleno = 57 (0x39), region = 16 }
  0x12   : > { %s3676_s22 = scalar_select %p2013_p10, 1, 0 }
  0x16   : > { %88 = sbr.rel (!%p35_p5) target bundleno = 57 (0x39), region = 20  ;;  %s89_s23 = sand.u32 (%p35_p5), 1, %s1935_s13  }
  0x17   : > { %s94_s24 = smul.u32 (%p35_p5), 102, %s1939_s14  ;;  %s2025_s29 = scalar_lea.sflag (%p35_p5), [#allocation5], %s89_s23 }
  0x18   : > { %s1800_s25 = smul.u32 (%p35_p5), 4080, %s89_s23 }
  0x19   : > { %s95_s26 = ssub.s32 (%p35_p5), 192, %s94_s24 }
  0x1a   : > { %p96_p12 = scmp.lt.s32.totalorder (%p35_p5), %s95_s26, 102  ;;  %s93_s30 = scalar_lea.vmem (%p35_p5), [#allocation4], %s1800_s25 }
  0x1c   : > { %s3684_s26 = smov (!%p96_p12, %s95_s26), 102 }
  0x1d   : > { %s2022_s27 = smul.u32 640, %s3684_s26 }
  0x1f   : > { %s101_s28 = ssub.s32 65280, %s2022_s27 }
  0x20   : > { %102 = vsyncadd %s2025_s29, %s101_s28  ;;  %p1789_p13 = scmp.ne.s32.totalorder %s2022_s27, 0  ;;  %s1810_s3 = smul.u32 65280, %s1939_s14 }
  0x21   : > { %s108_s4 = sshll.u32 %s93_s30, 4  ;;  %s1853_s15 = scalar_lea.hbm %s3671_s1, 122880  ;;  %s2035_s4 = int_to_ptr.vmem [resolvable:$true] %s108_s4 }
  0x22   : > { %s2033_s7 = scalar_lea.hbm %s3671_s1, %s1810_s3 }
  0x23   : > { %s1849_s8 = scalar_lea.hbm %s2033_s7, %s2022_s27  ;;  %p1854_p3 = scmp.lt.s32.totalorder %s2033_s7, %s3671_s1 }
  0x24   : > { %p1850_p0 = scmp.ne.s32.totalorder %s2033_s7, %s1849_s8  ;;  %p1855_p4 = scmp.lt.s32.totalorder %s1853_s15, %s1849_s8 }
  0x26   : > { %p1851_p1 = pnand %p1850_p0, %p1789_p13  ;;  %p1856_p5 = por %p1855_p4, %p1854_p3 }
  0x28   : > { %p1852_p2 = pneg %p1851_p1 }
  0x2a   : > { %p1857_p7 = pnand %p1856_p5, %p1852_p2 }
  0x2c   : > { %1860 = shalt.err (!%p1857_p7)
}
  0x2d   : > { %s1861_s23 = scalar_lea.vmem %s2035_s4, %s2022_s27  ;;  %s1941_s24 = smov [#allocation4]  }
  0x2e   : > { %p1862_p8 = scmp.ne.s32.totalorder %s2035_s4, %s1861_s23  ;;  %s1865_s25 = sshll.u32 %s1941_s24, 4  ;;  %s1866_s25 = int_to_ptr.vmem [resolvable:$false] %s1865_s25 }
  0x2f   : > { %s1867_s26 = scalar_lea.vmem %s1866_s25, 130560  ;;  %p1868_p1 = scmp.lt.s32.totalorder %s2035_s4, %s1866_s25 }
  0x30   : > { %p1863_p12 = pnand %p1862_p8, %p1789_p13  ;;  %p1869_p11 = scmp.lt.s32.totalorder %s1867_s26, %s1861_s23 }
  0x32   : > { %p1864_p0 = pneg %p1863_p12  ;;  %p1870_p10 = por %p1869_p11, %p1868_p1 }
  0x34   : > { %p1871_p3 = pnand %p1870_p10, %p1864_p0 }
  0x36   : > { %1874 = shalt.err (!%p1871_p3)
}
  0x37   : > { %s1942_s28 = smov 640   ;;  %s1943_s30 = smov 40  }
  0x38   : > { %114 = dma.hbm_to_vmem [thread:$0]  (%p1789_p13), %s2033_s7, %s2022_s27, %s2035_s4, %s2025_s29, %s1942_s28, %s1942_s28, %s1943_s30  }
  0x39 PF: > { %p1792_p2 = scmp.ge.s32.totalorder %s1939_s14, 1  ;;  %p116_p4 = scmp.lt.s32.totalorder %s1939_s14, 3 }
  0x3b   : > { %p117_p5 = pnand %p1792_p2, %p116_p4 }
  0x3c   : > { %s2064_s3 = sand.u32 (!%p117_p5), 1, %s1931_s12  }
  0x3d   : > { %120 = sbr.rel (%p117_p5) target bundleno = 359 (0x167), region = 24  ;;  %s123_s6 = scalar_lea.sflag (!%p117_p5), [#allocation5], %s2064_s3 }
  0x3e   : > { %s1802_s5 = smul.u32 (!%p117_p5), 4080, %s2064_s3 }
  0x40   : > { %s2068_s8 = scalar_lea.vmem (!%p117_p5), [#allocation4], %s1802_s5 }
  0x42   : > { %1918 = dma.done.wait (%p2004_p6), %s123_s6, 65280  }
  0x43   : > { %1920 = vsyncadd (%p2004_p6), %s123_s6, 4294902016  ;;  %s667_s27 = sld [smem:[#allocation3]]  ;;  %v157_v0 = vld [vmem:[%s2068_s8] sm:$0xff]  ;;  %v158_v2 = vld [vmem:[%s2068_s8 + $0x8] sm:$0xff]  ;;  %s2091_s20 = scalar_lea.vmem [#allocation7], %s1802_s5 }
  0x44   : > { %v159_v3 = vld [vmem:[%s2068_s8 + $0x10] sm:$0xff]  ;;  %v160_v7 = vld [vmem:[%s2068_s8 + $0x18] sm:$0xff]  ;;  %v161_v8 = vld [vmem:[%s2068_s8 + $0x20] sm:$0xff]  ;;  %s1690_s29 = scalar_lea.sflag [#allocation6], %s2064_s3  ;;  %s1697_s4 = smul.u32 (%p2009_p9), 102, %s1986_s0 }
  0x45   : > { %v162_v9 = vld [vmem:[%s2068_s8 + $0x28] sm:$0xff]  ;;  %v163_v13 = vld [vmem:[%s2068_s8 + $0x30] sm:$0xff]  ;;  %v164_v14 = vld [vmem:[%s2068_s8 + $0x38] sm:$0xff] }
  0x46   : > { %v165_v15 = vld [vmem:[%s2068_s8 + $0x40] sm:$0xff]  ;;  %v166_v19 = vld [vmem:[%s2068_s8 + $0x48] sm:$0xff]  ;;  %v167_v20 = vld [vmem:[%s2068_s8 + $0x50] sm:$0xff]  ;;  %s1698_s7 = ssub.s32 (%p2009_p9), 192, %s1697_s4 }
  0x47   : > { %v168_v21 = vld [vmem:[%s2068_s8 + $0x58] sm:$0xff]  ;;  %v169_v25 = vld [vmem:[%s2068_s8 + $0x60] sm:$0xff]  ;;  %v170_v26 = vld [vmem:[%s2068_s8 + $0x68] sm:$0xff]  ;;  %p1699_p6 = scmp.lt.s32.totalorder (%p2009_p9), %s1698_s7, 102 }
  0x48   : > { %v171_v27 = vld [vmem:[%s2068_s8 + $0x70] sm:$0xff]  ;;  %v172_v31 = vld [vmem:[%s2068_s8 + $0x78] sm:$0xff]  ;;  %v173_v32 = vld [vmem:[%s2068_s8 + $0x80] sm:$0xff] }
  0x49   : > { %v2075_v1 = vstv %s667_s27  ;;  %v174_v33 = vld [vmem:[%s2068_s8 + $0x88] sm:$0xff]  ;;  %v175_v37 = vld [vmem:[%s2068_s8 + $0x90] sm:$0xff]  ;;  %v176_v38 = vld [vmem:[%s2068_s8 + $0x98] sm:$0xff] }
  0x4a   : > { %v669_v4 = vmul.f32 %v2075_v1, %v157_v0  ;;  %v670_v5 = vmul.f32 %v2075_v1, %v158_v2  ;;  %v671_v6 = vmul.f32 %v2075_v1, %v159_v3  ;;  %v672_v10 = vmul.f32 %v2075_v1, %v160_v7  ;;  %v177_v39 = vld [vmem:[%s2068_s8 + $0xa0] sm:$0xff]  ;;  %v178_v43 = vld [vmem:[%s2068_s8 + $0xa8] sm:$0xff]  ;;  %v179_v44 = vld [vmem:[%s2068_s8 + $0xb0] sm:$0xff] }
  0x4b   : > { %v673_v11 = vmul.f32 %v2075_v1, %v161_v8  ;;  %v674_v12 = vmul.f32 %v2075_v1, %v162_v9  ;;  %v675_v16 = vmul.f32 %v2075_v1, %v163_v13  ;;  %v676_v17 = vmul.f32 %v2075_v1, %v164_v14  ;;  %v180_v45 = vld [vmem:[%s2068_s8 + $0xb8] sm:$0xff]  ;;  %v181_v49 = vld [vmem:[%s2068_s8 + $0xc0] sm:$0xff]  ;;  %v182_v50 = vld [vmem:[%s2068_s8 + $0xc8] sm:$0xff] }
  0x4c   : > { %1179 = vst [vmem:[%s2091_s20] sm:$0xff] %v669_v4  ;;  %1180 = vst [vmem:[%s2091_s20 + $0x8] sm:$0xff] %v670_v5  ;;  %v677_v18 = vmul.f32 %v2075_v1, %v165_v15  ;;  %v678_v22 = vmul.f32 %v2075_v1, %v166_v19  ;;  %v679_v23 = vmul.f32 %v2075_v1, %v167_v20  ;;  %v183_v51 = vld [vmem:[%s2068_s8 + $0xd0] sm:$0xff]  ;;  %v184_v55 = vld [vmem:[%s2068_s8 + $0xd8] sm:$0xff] }
  0x4d   : > { %1181 = vst [vmem:[%s2091_s20 + $0x10] sm:$0xff] %v671_v6  ;;  %1182 = vst [vmem:[%s2091_s20 + $0x18] sm:$0xff] %v672_v10  ;;  %v680_v24 = vmul.f32 %v2075_v1, %v168_v21  ;;  %v681_v28 = vmul.f32 %v2075_v1, %v169_v25  ;;  %v682_v29 = vmul.f32 %v2075_v1, %v170_v26  ;;  %v185_v56 = vld [vmem:[%s2068_s8 + $0xe0] sm:$0xff]  ;;  %v186_v57 = vld [vmem:[%s2068_s8 + $0xe8] sm:$0xff] }
  0x4e   : > { %1183 = vst [vmem:[%s2091_s20 + $0x20] sm:$0xff] %v673_v11  ;;  %1184 = vst [vmem:[%s2091_s20 + $0x28] sm:$0xff] %v674_v12  ;;  %v683_v30 = vmul.f32 %v2075_v1, %v171_v27  ;;  %v684_v34 = vmul.f32 %v2075_v1, %v172_v31  ;;  %v685_v35 = vmul.f32 %v2075_v1, %v173_v32  ;;  %v187_v61 = vld [vmem:[%s2068_s8 + $0xf0] sm:$0xff]  ;;  %v188_v62 = vld [vmem:[%s2068_s8 + $0xf8] sm:$0xff] }
  0x4f   : > { %1185 = vst [vmem:[%s2091_s20 + $0x30] sm:$0xff] %v675_v16  ;;  %1186 = vst [vmem:[%s2091_s20 + $0x38] sm:$0xff] %v676_v17  ;;  %v686_v36 = vmul.f32 %v2075_v1, %v174_v33  ;;  %v687_v40 = vmul.f32 %v2075_v1, %v175_v37  ;;  %v688_v41 = vmul.f32 %v2075_v1, %v176_v38  ;;  %v189_v63 = vld [vmem:[%s2068_s8 + $0x100] sm:$0xff]  ;;  %v190_v4 = vld [vmem:[%s2068_s8 + $0x108] sm:$0xff] }
  0x50   : > { %1187 = vst [vmem:[%s2091_s20 + $0x40] sm:$0xff] %v677_v18  ;;  %1188 = vst [vmem:[%s2091_s20 + $0x48] sm:$0xff] %v678_v22  ;;  %v689_v42 = vmul.f32 %v2075_v1, %v177_v39  ;;  %v690_v46 = vmul.f32 %v2075_v1, %v178_v43  ;;  %v691_v47 = vmul.f32 %v2075_v1, %v179_v44  ;;  %v191_v5 = vld [vmem:[%s2068_s8 + $0x110] sm:$0xff]  ;;  %v192_v6 = vld [vmem:[%s2068_s8 + $0x118] sm:$0xff] }
  0x51   : > { %1189 = vst [vmem:[%s2091_s20 + $0x50] sm:$0xff] %v679_v23  ;;  %1190 = vst [vmem:[%s2091_s20 + $0x58] sm:$0xff] %v680_v24  ;;  %v692_v48 = vmul.f32 %v2075_v1, %v180_v45  ;;  %v693_v52 = vmul.f32 %v2075_v1, %v181_v49  ;;  %v694_v53 = vmul.f32 %v2075_v1, %v182_v50  ;;  %v193_v10 = vld [vmem:[%s2068_s8 + $0x120] sm:$0xff]  ;;  %v194_v11 = vld [vmem:[%s2068_s8 + $0x128] sm:$0xff] }
  0x52   : > { %1191 = vst [vmem:[%s2091_s20 + $0x60] sm:$0xff] %v681_v28  ;;  %1192 = vst [vmem:[%s2091_s20 + $0x68] sm:$0xff] %v682_v29  ;;  %v695_v54 = vmul.f32 %v2075_v1, %v183_v51  ;;  %v696_v58 = vmul.f32 %v2075_v1, %v184_v55  ;;  %v697_v59 = vmul.f32 %v2075_v1, %v185_v56  ;;  %v195_v12 = vld [vmem:[%s2068_s8 + $0x130] sm:$0xff]  ;;  %v196_v16 = vld [vmem:[%s2068_s8 + $0x138] sm:$0xff] }
  0x53   : > { %1193 = vst [vmem:[%s2091_s20 + $0x70] sm:$0xff] %v683_v30  ;;  %1194 = vst [vmem:[%s2091_s20 + $0x78] sm:$0xff] %v684_v34  ;;  %v698_v60 = vmul.f32 %v2075_v1, %v186_v57  ;;  %v699_v0 = vmul.f32 %v2075_v1, %v187_v61  ;;  %v700_v2 = vmul.f32 %v2075_v1, %v188_v62  ;;  %v197_v17 = vld [vmem:[%s2068_s8 + $0x140] sm:$0xff]  ;;  %v198_v18 = vld [vmem:[%s2068_s8 + $0x148] sm:$0xff] }
  0x54   : > { %1195 = vst [vmem:[%s2091_s20 + $0x80] sm:$0xff] %v685_v35  ;;  %1196 = vst [vmem:[%s2091_s20 + $0x88] sm:$0xff] %v686_v36  ;;  %v701_v3 = vmul.f32 %v2075_v1, %v189_v63  ;;  %v702_v7 = vmul.f32 %v2075_v1, %v190_v4  ;;  %v703_v8 = vmul.f32 %v2075_v1, %v191_v5  ;;  %v199_v22 = vld [vmem:[%s2068_s8 + $0x150] sm:$0xff]  ;;  %v200_v23 = vld [vmem:[%s2068_s8 + $0x158] sm:$0xff] }
  0x55   : > { %1197 = vst [vmem:[%s2091_s20 + $0x90] sm:$0xff] %v687_v40  ;;  %1198 = vst [vmem:[%s2091_s20 + $0x98] sm:$0xff] %v688_v41  ;;  %v704_v9 = vmul.f32 %v2075_v1, %v192_v6  ;;  %v705_v13 = vmul.f32 %v2075_v1, %v193_v10  ;;  %v706_v14 = vmul.f32 %v2075_v1, %v194_v11  ;;  %v201_v24 = vld [vmem:[%s2068_s8 + $0x160] sm:$0xff]  ;;  %v202_v28 = vld [vmem:[%s2068_s8 + $0x168] sm:$0xff] }
  0x56   : > { %1199 = vst [vmem:[%s2091_s20 + $0xa0] sm:$0xff] %v689_v42  ;;  %1200 = vst [vmem:[%s2091_s20 + $0xa8] sm:$0xff] %v690_v46  ;;  %v707_v15 = vmul.f32 %v2075_v1, %v195_v12  ;;  %v708_v19 = vmul.f32 %v2075_v1, %v196_v16  ;;  %v709_v20 = vmul.f32 %v2075_v1, %v197_v17  ;;  %v203_v29 = vld [vmem:[%s2068_s8 + $0x170] sm:$0xff]  ;;  %v204_v30 = vld [vmem:[%s2068_s8 + $0x178] sm:$0xff] }
  0x57   : > { %1201 = vst [vmem:[%s2091_s20 + $0xb0] sm:$0xff] %v691_v47  ;;  %1202 = vst [vmem:[%s2091_s20 + $0xb8] sm:$0xff] %v692_v48  ;;  %v710_v21 = vmul.f32 %v2075_v1, %v198_v18  ;;  %v711_v25 = vmul.f32 %v2075_v1, %v199_v22  ;;  %v712_v26 = vmul.f32 %v2075_v1, %v200_v23  ;;  %v205_v34 = vld [vmem:[%s2068_s8 + $0x180] sm:$0xff]  ;;  %v206_v35 = vld [vmem:[%s2068_s8 + $0x188] sm:$0xff] }
  0x58   : > { %1203 = vst [vmem:[%s2091_s20 + $0xc0] sm:$0xff] %v693_v52  ;;  %1204 = vst [vmem:[%s2091_s20 + $0xc8] sm:$0xff] %v694_v53  ;;  %v713_v27 = vmul.f32 %v2075_v1, %v201_v24  ;;  %v714_v31 = vmul.f32 %v2075_v1, %v202_v28  ;;  %v715_v32 = vmul.f32 %v2075_v1, %v203_v29  ;;  %v207_v36 = vld [vmem:[%s2068_s8 + $0x190] sm:$0xff]  ;;  %v208_v40 = vld [vmem:[%s2068_s8 + $0x198] sm:$0xff] }
  0x59   : > { %1205 = vst [vmem:[%s2091_s20 + $0xd0] sm:$0xff] %v695_v54  ;;  %1206 = vst [vmem:[%s2091_s20 + $0xd8] sm:$0xff] %v696_v58  ;;  %v716_v33 = vmul.f32 %v2075_v1, %v204_v30  ;;  %v717_v37 = vmul.f32 %v2075_v1, %v205_v34  ;;  %v718_v38 = vmul.f32 %v2075_v1, %v206_v35  ;;  %v209_v41 = vld [vmem:[%s2068_s8 + $0x1a0] sm:$0xff]  ;;  %v210_v42 = vld [vmem:[%s2068_s8 + $0x1a8] sm:$0xff] }
  0x5a   : > { %1207 = vst [vmem:[%s2091_s20 + $0xe0] sm:$0xff] %v697_v59  ;;  %1208 = vst [vmem:[%s2091_s20 + $0xe8] sm:$0xff] %v698_v60  ;;  %v719_v39 = vmul.f32 %v2075_v1, %v207_v36  ;;  %v720_v43 = vmul.f32 %v2075_v1, %v208_v40  ;;  %v721_v44 = vmul.f32 %v2075_v1, %v209_v41  ;;  %v211_v46 = vld [vmem:[%s2068_s8 + $0x1b0] sm:$0xff]  ;;  %v212_v47 = vld [vmem:[%s2068_s8 + $0x1b8] sm:$0xff] }
  0x5b   : > { %1209 = vst [vmem:[%s2091_s20 + $0xf0] sm:$0xff] %v699_v0  ;;  %1210 = vst [vmem:[%s2091_s20 + $0xf8] sm:$0xff] %v700_v2  ;;  %v722_v45 = vmul.f32 %v2075_v1, %v210_v42  ;;  %v213_v48 = vld [vmem:[%s2068_s8 + $0x1c0] sm:$0xff]  ;;  %v723_v49 = vmul.f32 %v2075_v1, %v211_v46  ;;  %v724_v50 = vmul.f32 %v2075_v1, %v212_v47  ;;  %v214_v52 = vld [vmem:[%s2068_s8 + $0x1c8] sm:$0xff] }
  0x5c   : > { %1211 = vst [vmem:[%s2091_s20 + $0x100] sm:$0xff] %v701_v3  ;;  %1212 = vst [vmem:[%s2091_s20 + $0x108] sm:$0xff] %v702_v7  ;;  %v725_v51 = vmul.f32 %v2075_v1, %v213_v48  ;;  %v215_v53 = vld [vmem:[%s2068_s8 + $0x1d0] sm:$0xff]  ;;  %v216_v54 = vld [vmem:[%s2068_s8 + $0x1d8] sm:$0xff]  ;;  %v726_v55 = vmul.f32 %v2075_v1, %v214_v52 }
  0x5d   : > { %1213 = vst [vmem:[%s2091_s20 + $0x110] sm:$0xff] %v703_v8  ;;  %1214 = vst [vmem:[%s2091_s20 + $0x118] sm:$0xff] %v704_v9  ;;  %v727_v56 = vmul.f32 %v2075_v1, %v215_v53  ;;  %v728_v57 = vmul.f32 %v2075_v1, %v216_v54  ;;  %v217_v58 = vld [vmem:[%s2068_s8 + $0x1e0] sm:$0xff]  ;;  %v218_v59 = vld [vmem:[%s2068_s8 + $0x1e8] sm:$0xff] }
  0x5e   : > { %1215 = vst [vmem:[%s2091_s20 + $0x120] sm:$0xff] %v705_v13  ;;  %1216 = vst [vmem:[%s2091_s20 + $0x128] sm:$0xff] %v706_v14  ;;  %v219_v60 = vld [vmem:[%s2068_s8 + $0x1f0] sm:$0xff]  ;;  %v729_v61 = vmul.f32 %v2075_v1, %v217_v58  ;;  %v730_v62 = vmul.f32 %v2075_v1, %v218_v59  ;;  %v220_v0 = vld [vmem:[%s2068_s8 + $0x1f8] sm:$0xff] }
  0x5f   : > { %1217 = vst [vmem:[%s2091_s20 + $0x130] sm:$0xff] %v707_v15  ;;  %1218 = vst [vmem:[%s2091_s20 + $0x138] sm:$0xff] %v708_v19  ;;  %v731_v63 = vmul.f32 %v2075_v1, %v219_v60  ;;  %v221_v2 = vld [vmem:[%s2068_s8 + $0x200] sm:$0xff]  ;;  %v222_v3 = vld [vmem:[%s2068_s8 + $0x208] sm:$0xff]  ;;  %v732_v4 = vmul.f32 %v2075_v1, %v220_v0 }
  0x60   : > { %1219 = vst [vmem:[%s2091_s20 + $0x140] sm:$0xff] %v709_v20  ;;  %1220 = vst [vmem:[%s2091_s20 + $0x148] sm:$0xff] %v710_v21  ;;  %v733_v5 = vmul.f32 %v2075_v1, %v221_v2  ;;  %v734_v6 = vmul.f32 %v2075_v1, %v222_v3  ;;  %v223_v7 = vld [vmem:[%s2068_s8 + $0x210] sm:$0xff]  ;;  %v224_v8 = vld [vmem:[%s2068_s8 + $0x218] sm:$0xff] }
  0x61   : > { %1221 = vst [vmem:[%s2091_s20 + $0x150] sm:$0xff] %v711_v25  ;;  %1222 = vst [vmem:[%s2091_s20 + $0x158] sm:$0xff] %v712_v26  ;;  %v225_v9 = vld [vmem:[%s2068_s8 + $0x220] sm:$0xff]  ;;  %v735_v10 = vmul.f32 %v2075_v1, %v223_v7  ;;  %v736_v11 = vmul.f32 %v2075_v1, %v224_v8  ;;  %v226_v13 = vld [vmem:[%s2068_s8 + $0x228] sm:$0xff] }
  0x62   : > { %1223 = vst [vmem:[%s2091_s20 + $0x160] sm:$0xff] %v713_v27  ;;  %1224 = vst [vmem:[%s2091_s20 + $0x168] sm:$0xff] %v714_v31  ;;  %v737_v12 = vmul.f32 %v2075_v1, %v225_v9  ;;  %v227_v14 = vld [vmem:[%s2068_s8 + $0x230] sm:$0xff]  ;;  %v228_v15 = vld [vmem:[%s2068_s8 + $0x238] sm:$0xff]  ;;  %v738_v16 = vmul.f32 %v2075_v1, %v226_v13 }
  0x63   : > { %1225 = vst [vmem:[%s2091_s20 + $0x170] sm:$0xff] %v715_v32  ;;  %1226 = vst [vmem:[%s2091_s20 + $0x178] sm:$0xff] %v716_v33  ;;  %v739_v17 = vmul.f32 %v2075_v1, %v227_v14  ;;  %v740_v18 = vmul.f32 %v2075_v1, %v228_v15  ;;  %v229_v19 = vld [vmem:[%s2068_s8 + $0x240] sm:$0xff]  ;;  %v230_v20 = vld [vmem:[%s2068_s8 + $0x248] sm:$0xff] }
  0x64   : > { %1227 = vst [vmem:[%s2091_s20 + $0x180] sm:$0xff] %v717_v37  ;;  %1228 = vst [vmem:[%s2091_s20 + $0x188] sm:$0xff] %v718_v38  ;;  %v231_v21 = vld [vmem:[%s2068_s8 + $0x250] sm:$0xff]  ;;  %v741_v22 = vmul.f32 %v2075_v1, %v229_v19  ;;  %v742_v23 = vmul.f32 %v2075_v1, %v230_v20  ;;  %v232_v25 = vld [vmem:[%s2068_s8 + $0x258] sm:$0xff] }
  0x65   : > { %1229 = vst [vmem:[%s2091_s20 + $0x190] sm:$0xff] %v719_v39  ;;  %1230 = vst [vmem:[%s2091_s20 + $0x198] sm:$0xff] %v720_v43  ;;  %v743_v24 = vmul.f32 %v2075_v1, %v231_v21  ;;  %v233_v26 = vld [vmem:[%s2068_s8 + $0x260] sm:$0xff]  ;;  %v234_v27 = vld [vmem:[%s2068_s8 + $0x268] sm:$0xff]  ;;  %v744_v28 = vmul.f32 %v2075_v1, %v232_v25 }
  0x66   : > { %1231 = vst [vmem:[%s2091_s20 + $0x1a0] sm:$0xff] %v721_v44  ;;  %1232 = vst [vmem:[%s2091_s20 + $0x1a8] sm:$0xff] %v722_v45  ;;  %v745_v29 = vmul.f32 %v2075_v1, %v233_v26  ;;  %v746_v30 = vmul.f32 %v2075_v1, %v234_v27  ;;  %v235_v31 = vld [vmem:[%s2068_s8 + $0x270] sm:$0xff]  ;;  %v236_v32 = vld [vmem:[%s2068_s8 + $0x278] sm:$0xff] }
  0x67   : > { %1233 = vst [vmem:[%s2091_s20 + $0x1b0] sm:$0xff] %v723_v49  ;;  %1234 = vst [vmem:[%s2091_s20 + $0x1b8] sm:$0xff] %v724_v50  ;;  %v237_v33 = vld [vmem:[%s2068_s8 + $0x280] sm:$0xff]  ;;  %v747_v34 = vmul.f32 %v2075_v1, %v235_v31  ;;  %v748_v35 = vmul.f32 %v2075_v1, %v236_v32  ;;  %v238_v37 = vld [vmem:[%s2068_s8 + $0x288] sm:$0xff] }
  0x68   : > { %1235 = vst [vmem:[%s2091_s20 + $0x1c0] sm:$0xff] %v725_v51  ;;  %1236 = vst [vmem:[%s2091_s20 + $0x1c8] sm:$0xff] %v726_v55  ;;  %v749_v36 = vmul.f32 %v2075_v1, %v237_v33  ;;  %v239_v38 = vld [vmem:[%s2068_s8 + $0x290] sm:$0xff]  ;;  %v240_v39 = vld [vmem:[%s2068_s8 + $0x298] sm:$0xff]  ;;  %v750_v40 = vmul.f32 %v2075_v1, %v238_v37 }
  0x69   : > { %1237 = vst [vmem:[%s2091_s20 + $0x1d0] sm:$0xff] %v727_v56  ;;  %1238 = vst [vmem:[%s2091_s20 + $0x1d8] sm:$0xff] %v728_v57  ;;  %v751_v41 = vmul.f32 %v2075_v1, %v239_v38  ;;  %v752_v42 = vmul.f32 %v2075_v1, %v240_v39  ;;  %v241_v43 = vld [vmem:[%s2068_s8 + $0x2a0] sm:$0xff]  ;;  %v242_v44 = vld [vmem:[%s2068_s8 + $0x2a8] sm:$0xff] }
  0x6a   : > { %1239 = vst [vmem:[%s2091_s20 + $0x1e0] sm:$0xff] %v729_v61  ;;  %1240 = vst [vmem:[%s2091_s20 + $0x1e8] sm:$0xff] %v730_v62  ;;  %v243_v45 = vld [vmem:[%s2068_s8 + $0x2b0] sm:$0xff]  ;;  %v753_v46 = vmul.f32 %v2075_v1, %v241_v43  ;;  %v754_v47 = vmul.f32 %v2075_v1, %v242_v44  ;;  %v244_v49 = vld [vmem:[%s2068_s8 + $0x2b8] sm:$0xff] }
  0x6b   : > { %1241 = vst [vmem:[%s2091_s20 + $0x1f0] sm:$0xff] %v731_v63  ;;  %1242 = vst [vmem:[%s2091_s20 + $0x1f8] sm:$0xff] %v732_v4  ;;  %v755_v48 = vmul.f32 %v2075_v1, %v243_v45  ;;  %v245_v50 = vld [vmem:[%s2068_s8 + $0x2c0] sm:$0xff]  ;;  %v246_v51 = vld [vmem:[%s2068_s8 + $0x2c8] sm:$0xff]  ;;  %v756_v52 = vmul.f32 %v2075_v1, %v244_v49 }
  0x6c   : > { %1243 = vst [vmem:[%s2091_s20 + $0x200] sm:$0xff] %v733_v5  ;;  %1244 = vst [vmem:[%s2091_s20 + $0x208] sm:$0xff] %v734_v6  ;;  %v757_v53 = vmul.f32 %v2075_v1, %v245_v50  ;;  %v758_v54 = vmul.f32 %v2075_v1, %v246_v51  ;;  %v247_v55 = vld [vmem:[%s2068_s8 + $0x2d0] sm:$0xff]  ;;  %v248_v56 = vld [vmem:[%s2068_s8 + $0x2d8] sm:$0xff] }
  0x6d   : > { %1245 = vst [vmem:[%s2091_s20 + $0x210] sm:$0xff] %v735_v10  ;;  %1246 = vst [vmem:[%s2091_s20 + $0x218] sm:$0xff] %v736_v11  ;;  %v249_v57 = vld [vmem:[%s2068_s8 + $0x2e0] sm:$0xff]  ;;  %v759_v58 = vmul.f32 %v2075_v1, %v247_v55  ;;  %v760_v59 = vmul.f32 %v2075_v1, %v248_v56  ;;  %v250_v61 = vld [vmem:[%s2068_s8 + $0x2e8] sm:$0xff] }
  0x6e   : > { %1247 = vst [vmem:[%s2091_s20 + $0x220] sm:$0xff] %v737_v12  ;;  %1248 = vst [vmem:[%s2091_s20 + $0x228] sm:$0xff] %v738_v16  ;;  %v761_v60 = vmul.f32 %v2075_v1, %v249_v57  ;;  %v251_v62 = vld [vmem:[%s2068_s8 + $0x2f0] sm:$0xff]  ;;  %v252_v63 = vld [vmem:[%s2068_s8 + $0x2f8] sm:$0xff]  ;;  %v762_v0 = vmul.f32 %v2075_v1, %v250_v61 }
  0x6f   : > { %1249 = vst [vmem:[%s2091_s20 + $0x230] sm:$0xff] %v739_v17  ;;  %1250 = vst [vmem:[%s2091_s20 + $0x238] sm:$0xff] %v740_v18  ;;  %v763_v2 = vmul.f32 %v2075_v1, %v251_v62  ;;  %v764_v3 = vmul.f32 %v2075_v1, %v252_v63  ;;  %v253_v4 = vld [vmem:[%s2068_s8 + $0x300] sm:$0xff]  ;;  %v254_v5 = vld [vmem:[%s2068_s8 + $0x308] sm:$0xff] }
  0x70   : > { %1251 = vst [vmem:[%s2091_s20 + $0x240] sm:$0xff] %v741_v22  ;;  %1252 = vst [vmem:[%s2091_s20 + $0x248] sm:$0xff] %v742_v23  ;;  %v255_v6 = vld [vmem:[%s2068_s8 + $0x310] sm:$0xff]  ;;  %v765_v7 = vmul.f32 %v2075_v1, %v253_v4  ;;  %v766_v8 = vmul.f32 %v2075_v1, %v254_v5  ;;  %v256_v10 = vld [vmem:[%s2068_s8 + $0x318] sm:$0xff] }
  0x71   : > { %1253 = vst [vmem:[%s2091_s20 + $0x250] sm:$0xff] %v743_v24  ;;  %1254 = vst [vmem:[%s2091_s20 + $0x258] sm:$0xff] %v744_v28  ;;  %v767_v9 = vmul.f32 %v2075_v1, %v255_v6  ;;  %v257_v11 = vld [vmem:[%s2068_s8 + $0x320] sm:$0xff]  ;;  %v258_v12 = vld [vmem:[%s2068_s8 + $0x328] sm:$0xff]  ;;  %v768_v13 = vmul.f32 %v2075_v1, %v256_v10 }
  0x72   : > { %1255 = vst [vmem:[%s2091_s20 + $0x260] sm:$0xff] %v745_v29  ;;  %1256 = vst [vmem:[%s2091_s20 + $0x268] sm:$0xff] %v746_v30  ;;  %v769_v14 = vmul.f32 %v2075_v1, %v257_v11  ;;  %v770_v15 = vmul.f32 %v2075_v1, %v258_v12  ;;  %v259_v16 = vld [vmem:[%s2068_s8 + $0x330] sm:$0xff]  ;;  %v260_v17 = vld [vmem:[%s2068_s8 + $0x338] sm:$0xff] }
  0x73   : > { %1257 = vst [vmem:[%s2091_s20 + $0x270] sm:$0xff] %v747_v34  ;;  %1258 = vst [vmem:[%s2091_s20 + $0x278] sm:$0xff] %v748_v35  ;;  %v261_v18 = vld [vmem:[%s2068_s8 + $0x340] sm:$0xff]  ;;  %v771_v19 = vmul.f32 %v2075_v1, %v259_v16  ;;  %v772_v20 = vmul.f32 %v2075_v1, %v260_v17  ;;  %v262_v22 = vld [vmem:[%s2068_s8 + $0x348] sm:$0xff] }
  0x74   : > { %1259 = vst [vmem:[%s2091_s20 + $0x280] sm:$0xff] %v749_v36  ;;  %1260 = vst [vmem:[%s2091_s20 + $0x288] sm:$0xff] %v750_v40  ;;  %v773_v21 = vmul.f32 %v2075_v1, %v261_v18  ;;  %v263_v23 = vld [vmem:[%s2068_s8 + $0x350] sm:$0xff]  ;;  %v264_v24 = vld [vmem:[%s2068_s8 + $0x358] sm:$0xff]  ;;  %v774_v25 = vmul.f32 %v2075_v1, %v262_v22 }
  0x75   : > { %1261 = vst [vmem:[%s2091_s20 + $0x290] sm:$0xff] %v751_v41  ;;  %1262 = vst [vmem:[%s2091_s20 + $0x298] sm:$0xff] %v752_v42  ;;  %v775_v26 = vmul.f32 %v2075_v1, %v263_v23  ;;  %v776_v27 = vmul.f32 %v2075_v1, %v264_v24  ;;  %v265_v28 = vld [vmem:[%s2068_s8 + $0x360] sm:$0xff]  ;;  %v266_v29 = vld [vmem:[%s2068_s8 + $0x368] sm:$0xff] }
  0x76   : > { %1263 = vst [vmem:[%s2091_s20 + $0x2a0] sm:$0xff] %v753_v46  ;;  %1264 = vst [vmem:[%s2091_s20 + $0x2a8] sm:$0xff] %v754_v47  ;;  %v267_v30 = vld [vmem:[%s2068_s8 + $0x370] sm:$0xff]  ;;  %v777_v31 = vmul.f32 %v2075_v1, %v265_v28  ;;  %v778_v32 = vmul.f32 %v2075_v1, %v266_v29  ;;  %v268_v34 = vld [vmem:[%s2068_s8 + $0x378] sm:$0xff] }
  0x77   : > { %1265 = vst [vmem:[%s2091_s20 + $0x2b0] sm:$0xff] %v755_v48  ;;  %1266 = vst [vmem:[%s2091_s20 + $0x2b8] sm:$0xff] %v756_v52  ;;  %v779_v33 = vmul.f32 %v2075_v1, %v267_v30  ;;  %v269_v35 = vld [vmem:[%s2068_s8 + $0x380] sm:$0xff]  ;;  %v270_v36 = vld [vmem:[%s2068_s8 + $0x388] sm:$0xff]  ;;  %v780_v37 = vmul.f32 %v2075_v1, %v268_v34 }
  0x78   : > { %1267 = vst [vmem:[%s2091_s20 + $0x2c0] sm:$0xff] %v757_v53  ;;  %1268 = vst [vmem:[%s2091_s20 + $0x2c8] sm:$0xff] %v758_v54  ;;  %v781_v38 = vmul.f32 %v2075_v1, %v269_v35  ;;  %v782_v39 = vmul.f32 %v2075_v1, %v270_v36  ;;  %v271_v40 = vld [vmem:[%s2068_s8 + $0x390] sm:$0xff]  ;;  %v272_v41 = vld [vmem:[%s2068_s8 + $0x398] sm:$0xff] }
  0x79   : > { %1269 = vst [vmem:[%s2091_s20 + $0x2d0] sm:$0xff] %v759_v58  ;;  %1270 = vst [vmem:[%s2091_s20 + $0x2d8] sm:$0xff] %v760_v59  ;;  %v273_v42 = vld [vmem:[%s2068_s8 + $0x3a0] sm:$0xff]  ;;  %v783_v43 = vmul.f32 %v2075_v1, %v271_v40  ;;  %v784_v44 = vmul.f32 %v2075_v1, %v272_v41  ;;  %v274_v46 = vld [vmem:[%s2068_s8 + $0x3a8] sm:$0xff] }
  0x7a   : > { %1271 = vst [vmem:[%s2091_s20 + $0x2e0] sm:$0xff] %v761_v60  ;;  %1272 = vst [vmem:[%s2091_s20 + $0x2e8] sm:$0xff] %v762_v0  ;;  %v785_v45 = vmul.f32 %v2075_v1, %v273_v42  ;;  %v275_v47 = vld [vmem:[%s2068_s8 + $0x3b0] sm:$0xff]  ;;  %v276_v48 = vld [vmem:[%s2068_s8 + $0x3b8] sm:$0xff]  ;;  %v786_v49 = vmul.f32 %v2075_v1, %v274_v46 }
  0x7b   : > { %1273 = vst [vmem:[%s2091_s20 + $0x2f0] sm:$0xff] %v763_v2  ;;  %1274 = vst [vmem:[%s2091_s20 + $0x2f8] sm:$0xff] %v764_v3  ;;  %v787_v50 = vmul.f32 %v2075_v1, %v275_v47  ;;  %v788_v51 = vmul.f32 %v2075_v1, %v276_v48  ;;  %v277_v52 = vld [vmem:[%s2068_s8 + $0x3c0] sm:$0xff]  ;;  %v278_v53 = vld [vmem:[%s2068_s8 + $0x3c8] sm:$0xff] }
  0x7c   : > { %1275 = vst [vmem:[%s2091_s20 + $0x300] sm:$0xff] %v765_v7  ;;  %1276 = vst [vmem:[%s2091_s20 + $0x308] sm:$0xff] %v766_v8  ;;  %v279_v54 = vld [vmem:[%s2068_s8 + $0x3d0] sm:$0xff]  ;;  %v789_v55 = vmul.f32 %v2075_v1, %v277_v52  ;;  %v790_v56 = vmul.f32 %v2075_v1, %v278_v53  ;;  %v280_v58 = vld [vmem:[%s2068_s8 + $0x3d8] sm:$0xff] }
  0x7d   : > { %1277 = vst [vmem:[%s2091_s20 + $0x310] sm:$0xff] %v767_v9  ;;  %1278 = vst [vmem:[%s2091_s20 + $0x318] sm:$0xff] %v768_v13  ;;  %v791_v57 = vmul.f32 %v2075_v1, %v279_v54  ;;  %v281_v59 = vld [vmem:[%s2068_s8 + $0x3e0] sm:$0xff]  ;;  %v282_v60 = vld [vmem:[%s2068_s8 + $0x3e8] sm:$0xff]  ;;  %v792_v61 = vmul.f32 %v2075_v1, %v280_v58 }
  0x7e   : > { %1279 = vst [vmem:[%s2091_s20 + $0x320] sm:$0xff] %v769_v14  ;;  %1280 = vst [vmem:[%s2091_s20 + $0x328] sm:$0xff] %v770_v15  ;;  %v793_v62 = vmul.f32 %v2075_v1, %v281_v59  ;;  %v794_v63 = vmul.f32 %v2075_v1, %v282_v60  ;;  %v283_v0 = vld [vmem:[%s2068_s8 + $0x3f0] sm:$0xff]  ;;  %v284_v2 = vld [vmem:[%s2068_s8 + $0x3f8] sm:$0xff] }
  0x7f   : > { %1281 = vst [vmem:[%s2091_s20 + $0x330] sm:$0xff] %v771_v19  ;;  %1282 = vst [vmem:[%s2091_s20 + $0x338] sm:$0xff] %v772_v20  ;;  %v285_v3 = vld [vmem:[%s2068_s8 + $0x400] sm:$0xff]  ;;  %v795_v4 = vmul.f32 %v2075_v1, %v283_v0  ;;  %v796_v5 = vmul.f32 %v2075_v1, %v284_v2  ;;  %v286_v7 = vld [vmem:[%s2068_s8 + $0x408] sm:$0xff] }
  0x80   : > { %1283 = vst [vmem:[%s2091_s20 + $0x340] sm:$0xff] %v773_v21  ;;  %1284 = vst [vmem:[%s2091_s20 + $0x348] sm:$0xff] %v774_v25  ;;  %v797_v6 = vmul.f32 %v2075_v1, %v285_v3  ;;  %v287_v8 = vld [vmem:[%s2068_s8 + $0x410] sm:$0xff]  ;;  %v288_v9 = vld [vmem:[%s2068_s8 + $0x418] sm:$0xff]  ;;  %v798_v10 = vmul.f32 %v2075_v1, %v286_v7 }
  0x81   : > { %1285 = vst [vmem:[%s2091_s20 + $0x350] sm:$0xff] %v775_v26  ;;  %1286 = vst [vmem:[%s2091_s20 + $0x358] sm:$0xff] %v776_v27  ;;  %v799_v11 = vmul.f32 %v2075_v1, %v287_v8  ;;  %v800_v12 = vmul.f32 %v2075_v1, %v288_v9  ;;  %v289_v13 = vld [vmem:[%s2068_s8 + $0x420] sm:$0xff]  ;;  %v290_v14 = vld [vmem:[%s2068_s8 + $0x428] sm:$0xff] }
  0x82   : > { %1287 = vst [vmem:[%s2091_s20 + $0x360] sm:$0xff] %v777_v31  ;;  %1288 = vst [vmem:[%s2091_s20 + $0x368] sm:$0xff] %v778_v32  ;;  %v291_v15 = vld [vmem:[%s2068_s8 + $0x430] sm:$0xff]  ;;  %v801_v16 = vmul.f32 %v2075_v1, %v289_v13  ;;  %v802_v17 = vmul.f32 %v2075_v1, %v290_v14  ;;  %v292_v19 = vld [vmem:[%s2068_s8 + $0x438] sm:$0xff] }
  0x83   : > { %1289 = vst [vmem:[%s2091_s20 + $0x370] sm:$0xff] %v779_v33  ;;  %1290 = vst [vmem:[%s2091_s20 + $0x378] sm:$0xff] %v780_v37  ;;  %v803_v18 = vmul.f32 %v2075_v1, %v291_v15  ;;  %v293_v20 = vld [vmem:[%s2068_s8 + $0x440] sm:$0xff]  ;;  %v294_v21 = vld [vmem:[%s2068_s8 + $0x448] sm:$0xff]  ;;  %v804_v22 = vmul.f32 %v2075_v1, %v292_v19 }
  0x84   : > { %1291 = vst [vmem:[%s2091_s20 + $0x380] sm:$0xff] %v781_v38  ;;  %1292 = vst [vmem:[%s2091_s20 + $0x388] sm:$0xff] %v782_v39  ;;  %v805_v23 = vmul.f32 %v2075_v1, %v293_v20  ;;  %v806_v24 = vmul.f32 %v2075_v1, %v294_v21  ;;  %v295_v25 = vld [vmem:[%s2068_s8 + $0x450] sm:$0xff]  ;;  %v296_v26 = vld [vmem:[%s2068_s8 + $0x458] sm:$0xff] }
  0x85   : > { %1293 = vst [vmem:[%s2091_s20 + $0x390] sm:$0xff] %v783_v43  ;;  %1294 = vst [vmem:[%s2091_s20 + $0x398] sm:$0xff] %v784_v44  ;;  %v297_v27 = vld [vmem:[%s2068_s8 + $0x460] sm:$0xff]  ;;  %v807_v28 = vmul.f32 %v2075_v1, %v295_v25  ;;  %v808_v29 = vmul.f32 %v2075_v1, %v296_v26  ;;  %v298_v31 = vld [vmem:[%s2068_s8 + $0x468] sm:$0xff] }
  0x86   : > { %1295 = vst [vmem:[%s2091_s20 + $0x3a0] sm:$0xff] %v785_v45  ;;  %1296 = vst [vmem:[%s2091_s20 + $0x3a8] sm:$0xff] %v786_v49  ;;  %v809_v30 = vmul.f32 %v2075_v1, %v297_v27  ;;  %v299_v32 = vld [vmem:[%s2068_s8 + $0x470] sm:$0xff]  ;;  %v300_v33 = vld [vmem:[%s2068_s8 + $0x478] sm:$0xff]  ;;  %v810_v34 = vmul.f32 %v2075_v1, %v298_v31 }
  0x87   : > { %1297 = vst [vmem:[%s2091_s20 + $0x3b0] sm:$0xff] %v787_v50  ;;  %1298 = vst [vmem:[%s2091_s20 + $0x3b8] sm:$0xff] %v788_v51  ;;  %v811_v35 = vmul.f32 %v2075_v1, %v299_v32  ;;  %v812_v36 = vmul.f32 %v2075_v1, %v300_v33  ;;  %v301_v37 = vld [vmem:[%s2068_s8 + $0x480] sm:$0xff]  ;;  %v302_v38 = vld [vmem:[%s2068_s8 + $0x488] sm:$0xff] }
  0x88   : > { %1299 = vst [vmem:[%s2091_s20 + $0x3c0] sm:$0xff] %v789_v55  ;;  %1300 = vst [vmem:[%s2091_s20 + $0x3c8] sm:$0xff] %v790_v56  ;;  %v303_v39 = vld [vmem:[%s2068_s8 + $0x490] sm:$0xff]  ;;  %v813_v40 = vmul.f32 %v2075_v1, %v301_v37  ;;  %v814_v41 = vmul.f32 %v2075_v1, %v302_v38  ;;  %v304_v43 = vld [vmem:[%s2068_s8 + $0x498] sm:$0xff] }
  0x89   : > { %1301 = vst [vmem:[%s2091_s20 + $0x3d0] sm:$0xff] %v791_v57  ;;  %1302 = vst [vmem:[%s2091_s20 + $0x3d8] sm:$0xff] %v792_v61  ;;  %v815_v42 = vmul.f32 %v2075_v1, %v303_v39  ;;  %v305_v44 = vld [vmem:[%s2068_s8 + $0x4a0] sm:$0xff]  ;;  %v306_v45 = vld [vmem:[%s2068_s8 + $0x4a8] sm:$0xff]  ;;  %v816_v46 = vmul.f32 %v2075_v1, %v304_v43 }
  0x8a   : > { %1303 = vst [vmem:[%s2091_s20 + $0x3e0] sm:$0xff] %v793_v62  ;;  %1304 = vst [vmem:[%s2091_s20 + $0x3e8] sm:$0xff] %v794_v63  ;;  %v817_v47 = vmul.f32 %v2075_v1, %v305_v44  ;;  %v818_v48 = vmul.f32 %v2075_v1, %v306_v45  ;;  %v307_v49 = vld [vmem:[%s2068_s8 + $0x4b0] sm:$0xff]  ;;  %v308_v50 = vld [vmem:[%s2068_s8 + $0x4b8] sm:$0xff] }
  0x8b   : > { %1305 = vst [vmem:[%s2091_s20 + $0x3f0] sm:$0xff] %v795_v4  ;;  %1306 = vst [vmem:[%s2091_s20 + $0x3f8] sm:$0xff] %v796_v5  ;;  %v309_v51 = vld [vmem:[%s2068_s8 + $0x4c0] sm:$0xff]  ;;  %v819_v52 = vmul.f32 %v2075_v1, %v307_v49  ;;  %v820_v53 = vmul.f32 %v2075_v1, %v308_v50  ;;  %v310_v55 = vld [vmem:[%s2068_s8 + $0x4c8] sm:$0xff] }
  0x8c   : > { %1307 = vst [vmem:[%s2091_s20 + $0x400] sm:$0xff] %v797_v6  ;;  %1308 = vst [vmem:[%s2091_s20 + $0x408] sm:$0xff] %v798_v10  ;;  %v821_v54 = vmul.f32 %v2075_v1, %v309_v51  ;;  %v311_v56 = vld [vmem:[%s2068_s8 + $0x4d0] sm:$0xff]  ;;  %v312_v57 = vld [vmem:[%s2068_s8 + $0x4d8] sm:$0xff]  ;;  %v822_v58 = vmul.f32 %v2075_v1, %v310_v55 }
  0x8d   : > { %1309 = vst [vmem:[%s2091_s20 + $0x410] sm:$0xff] %v799_v11  ;;  %1310 = vst [vmem:[%s2091_s20 + $0x418] sm:$0xff] %v800_v12  ;;  %v823_v59 = vmul.f32 %v2075_v1, %v311_v56  ;;  %v824_v60 = vmul.f32 %v2075_v1, %v312_v57  ;;  %v313_v61 = vld [vmem:[%s2068_s8 + $0x4e0] sm:$0xff]  ;;  %v314_v62 = vld [vmem:[%s2068_s8 + $0x4e8] sm:$0xff] }
  0x8e   : > { %1311 = vst [vmem:[%s2091_s20 + $0x420] sm:$0xff] %v801_v16  ;;  %1312 = vst [vmem:[%s2091_s20 + $0x428] sm:$0xff] %v802_v17  ;;  %v315_v63 = vld [vmem:[%s2068_s8 + $0x4f0] sm:$0xff]  ;;  %v825_v0 = vmul.f32 %v2075_v1, %v313_v61  ;;  %v826_v2 = vmul.f32 %v2075_v1, %v314_v62  ;;  %v316_v4 = vld [vmem:[%s2068_s8 + $0x4f8] sm:$0xff] }
  0x8f   : > { %1313 = vst [vmem:[%s2091_s20 + $0x430] sm:$0xff] %v803_v18  ;;  %1314 = vst [vmem:[%s2091_s20 + $0x438] sm:$0xff] %v804_v22  ;;  %v827_v3 = vmul.f32 %v2075_v1, %v315_v63  ;;  %v317_v5 = vld [vmem:[%s2068_s8 + $0x500] sm:$0xff]  ;;  %v318_v6 = vld [vmem:[%s2068_s8 + $0x508] sm:$0xff]  ;;  %v828_v7 = vmul.f32 %v2075_v1, %v316_v4 }
  0x90   : > { %1315 = vst [vmem:[%s2091_s20 + $0x440] sm:$0xff] %v805_v23  ;;  %1316 = vst [vmem:[%s2091_s20 + $0x448] sm:$0xff] %v806_v24  ;;  %v829_v8 = vmul.f32 %v2075_v1, %v317_v5  ;;  %v830_v9 = vmul.f32 %v2075_v1, %v318_v6  ;;  %v319_v10 = vld [vmem:[%s2068_s8 + $0x510] sm:$0xff]  ;;  %v320_v11 = vld [vmem:[%s2068_s8 + $0x518] sm:$0xff] }
  0x91   : > { %1317 = vst [vmem:[%s2091_s20 + $0x450] sm:$0xff] %v807_v28  ;;  %1318 = vst [vmem:[%s2091_s20 + $0x458] sm:$0xff] %v808_v29  ;;  %v321_v12 = vld [vmem:[%s2068_s8 + $0x520] sm:$0xff]  ;;  %v831_v13 = vmul.f32 %v2075_v1, %v319_v10  ;;  %v832_v14 = vmul.f32 %v2075_v1, %v320_v11  ;;  %v322_v16 = vld [vmem:[%s2068_s8 + $0x528] sm:$0xff] }
  0x92   : > { %1319 = vst [vmem:[%s2091_s20 + $0x460] sm:$0xff] %v809_v30  ;;  %1320 = vst [vmem:[%s2091_s20 + $0x468] sm:$0xff] %v810_v34  ;;  %v833_v15 = vmul.f32 %v2075_v1, %v321_v12  ;;  %v323_v17 = vld [vmem:[%s2068_s8 + $0x530] sm:$0xff]  ;;  %v324_v18 = vld [vmem:[%s2068_s8 + $0x538] sm:$0xff]  ;;  %v834_v19 = vmul.f32 %v2075_v1, %v322_v16 }
  0x93   : > { %1321 = vst [vmem:[%s2091_s20 + $0x470] sm:$0xff] %v811_v35  ;;  %1322 = vst [vmem:[%s2091_s20 + $0x478] sm:$0xff] %v812_v36  ;;  %v835_v20 = vmul.f32 %v2075_v1, %v323_v17  ;;  %v836_v21 = vmul.f32 %v2075_v1, %v324_v18  ;;  %v325_v22 = vld [vmem:[%s2068_s8 + $0x540] sm:$0xff]  ;;  %v326_v23 = vld [vmem:[%s2068_s8 + $0x548] sm:$0xff] }
  0x94   : > { %1323 = vst [vmem:[%s2091_s20 + $0x480] sm:$0xff] %v813_v40  ;;  %1324 = vst [vmem:[%s2091_s20 + $0x488] sm:$0xff] %v814_v41  ;;  %v327_v24 = vld [vmem:[%s2068_s8 + $0x550] sm:$0xff]  ;;  %v837_v25 = vmul.f32 %v2075_v1, %v325_v22  ;;  %v838_v26 = vmul.f32 %v2075_v1, %v326_v23  ;;  %v328_v28 = vld [vmem:[%s2068_s8 + $0x558] sm:$0xff] }
  0x95   : > { %1325 = vst [vmem:[%s2091_s20 + $0x490] sm:$0xff] %v815_v42  ;;  %1326 = vst [vmem:[%s2091_s20 + $0x498] sm:$0xff] %v816_v46  ;;  %v839_v27 = vmul.f32 %v2075_v1, %v327_v24  ;;  %v329_v29 = vld [vmem:[%s2068_s8 + $0x560] sm:$0xff]  ;;  %v330_v30 = vld [vmem:[%s2068_s8 + $0x568] sm:$0xff]  ;;  %v840_v31 = vmul.f32 %v2075_v1, %v328_v28 }
  0x96   : > { %1327 = vst [vmem:[%s2091_s20 + $0x4a0] sm:$0xff] %v817_v47  ;;  %1328 = vst [vmem:[%s2091_s20 + $0x4a8] sm:$0xff] %v818_v48  ;;  %v841_v32 = vmul.f32 %v2075_v1, %v329_v29  ;;  %v842_v33 = vmul.f32 %v2075_v1, %v330_v30  ;;  %v331_v34 = vld [vmem:[%s2068_s8 + $0x570] sm:$0xff]  ;;  %v332_v35 = vld [vmem:[%s2068_s8 + $0x578] sm:$0xff] }
  0x97   : > { %1329 = vst [vmem:[%s2091_s20 + $0x4b0] sm:$0xff] %v819_v52  ;;  %1330 = vst [vmem:[%s2091_s20 + $0x4b8] sm:$0xff] %v820_v53  ;;  %v333_v36 = vld [vmem:[%s2068_s8 + $0x580] sm:$0xff]  ;;  %v843_v37 = vmul.f32 %v2075_v1, %v331_v34  ;;  %v844_v38 = vmul.f32 %v2075_v1, %v332_v35  ;;  %v334_v40 = vld [vmem:[%s2068_s8 + $0x588] sm:$0xff] }
  0x98   : > { %1331 = vst [vmem:[%s2091_s20 + $0x4c0] sm:$0xff] %v821_v54  ;;  %1332 = vst [vmem:[%s2091_s20 + $0x4c8] sm:$0xff] %v822_v58  ;;  %v845_v39 = vmul.f32 %v2075_v1, %v333_v36  ;;  %v335_v41 = vld [vmem:[%s2068_s8 + $0x590] sm:$0xff]  ;;  %v336_v42 = vld [vmem:[%s2068_s8 + $0x598] sm:$0xff]  ;;  %v846_v43 = vmul.f32 %v2075_v1, %v334_v40 }
  0x99   : > { %1333 = vst [vmem:[%s2091_s20 + $0x4d0] sm:$0xff] %v823_v59  ;;  %1334 = vst [vmem:[%s2091_s20 + $0x4d8] sm:$0xff] %v824_v60  ;;  %v847_v44 = vmul.f32 %v2075_v1, %v335_v41  ;;  %v848_v45 = vmul.f32 %v2075_v1, %v336_v42  ;;  %v337_v46 = vld [vmem:[%s2068_s8 + $0x5a0] sm:$0xff]  ;;  %v338_v47 = vld [vmem:[%s2068_s8 + $0x5a8] sm:$0xff] }
  0x9a   : > { %1335 = vst [vmem:[%s2091_s20 + $0x4e0] sm:$0xff] %v825_v0  ;;  %1336 = vst [vmem:[%s2091_s20 + $0x4e8] sm:$0xff] %v826_v2  ;;  %v339_v48 = vld [vmem:[%s2068_s8 + $0x5b0] sm:$0xff]  ;;  %v849_v49 = vmul.f32 %v2075_v1, %v337_v46  ;;  %v850_v50 = vmul.f32 %v2075_v1, %v338_v47  ;;  %v340_v52 = vld [vmem:[%s2068_s8 + $0x5b8] sm:$0xff] }
  0x9b   : > { %1337 = vst [vmem:[%s2091_s20 + $0x4f0] sm:$0xff] %v827_v3  ;;  %1338 = vst [vmem:[%s2091_s20 + $0x4f8] sm:$0xff] %v828_v7  ;;  %v851_v51 = vmul.f32 %v2075_v1, %v339_v48  ;;  %v341_v53 = vld [vmem:[%s2068_s8 + $0x5c0] sm:$0xff]  ;;  %v342_v54 = vld [vmem:[%s2068_s8 + $0x5c8] sm:$0xff]  ;;  %v852_v55 = vmul.f32 %v2075_v1, %v340_v52 }
  0x9c   : > { %1339 = vst [vmem:[%s2091_s20 + $0x500] sm:$0xff] %v829_v8  ;;  %1340 = vst [vmem:[%s2091_s20 + $0x508] sm:$0xff] %v830_v9  ;;  %v853_v56 = vmul.f32 %v2075_v1, %v341_v53  ;;  %v854_v57 = vmul.f32 %v2075_v1, %v342_v54  ;;  %v343_v58 = vld [vmem:[%s2068_s8 + $0x5d0] sm:$0xff]  ;;  %v344_v59 = vld [vmem:[%s2068_s8 + $0x5d8] sm:$0xff] }
  0x9d   : > { %1341 = vst [vmem:[%s2091_s20 + $0x510] sm:$0xff] %v831_v13  ;;  %1342 = vst [vmem:[%s2091_s20 + $0x518] sm:$0xff] %v832_v14  ;;  %v345_v60 = vld [vmem:[%s2068_s8 + $0x5e0] sm:$0xff]  ;;  %v855_v61 = vmul.f32 %v2075_v1, %v343_v58  ;;  %v856_v62 = vmul.f32 %v2075_v1, %v344_v59  ;;  %v346_v0 = vld [vmem:[%s2068_s8 + $0x5e8] sm:$0xff] }
  0x9e   : > { %1343 = vst [vmem:[%s2091_s20 + $0x520] sm:$0xff] %v833_v15  ;;  %1344 = vst [vmem:[%s2091_s20 + $0x528] sm:$0xff] %v834_v19  ;;  %v857_v63 = vmul.f32 %v2075_v1, %v345_v60  ;;  %v347_v2 = vld [vmem:[%s2068_s8 + $0x5f0] sm:$0xff]  ;;  %v348_v3 = vld [vmem:[%s2068_s8 + $0x5f8] sm:$0xff]  ;;  %v858_v4 = vmul.f32 %v2075_v1, %v346_v0 }
  0x9f   : > { %1345 = vst [vmem:[%s2091_s20 + $0x530] sm:$0xff] %v835_v20  ;;  %1346 = vst [vmem:[%s2091_s20 + $0x538] sm:$0xff] %v836_v21  ;;  %v859_v5 = vmul.f32 %v2075_v1, %v347_v2  ;;  %v860_v6 = vmul.f32 %v2075_v1, %v348_v3  ;;  %v349_v7 = vld [vmem:[%s2068_s8 + $0x600] sm:$0xff]  ;;  %v350_v8 = vld [vmem:[%s2068_s8 + $0x608] sm:$0xff] }
  0xa0   : > { %1347 = vst [vmem:[%s2091_s20 + $0x540] sm:$0xff] %v837_v25  ;;  %1348 = vst [vmem:[%s2091_s20 + $0x548] sm:$0xff] %v838_v26  ;;  %v351_v9 = vld [vmem:[%s2068_s8 + $0x610] sm:$0xff]  ;;  %v861_v10 = vmul.f32 %v2075_v1, %v349_v7  ;;  %v862_v11 = vmul.f32 %v2075_v1, %v350_v8  ;;  %v352_v13 = vld [vmem:[%s2068_s8 + $0x618] sm:$0xff] }
  0xa1   : > { %1349 = vst [vmem:[%s2091_s20 + $0x550] sm:$0xff] %v839_v27  ;;  %1350 = vst [vmem:[%s2091_s20 + $0x558] sm:$0xff] %v840_v31  ;;  %v863_v12 = vmul.f32 %v2075_v1, %v351_v9  ;;  %v353_v14 = vld [vmem:[%s2068_s8 + $0x620] sm:$0xff]  ;;  %v354_v15 = vld [vmem:[%s2068_s8 + $0x628] sm:$0xff]  ;;  %v864_v16 = vmul.f32 %v2075_v1, %v352_v13 }
  0xa2   : > { %1351 = vst [vmem:[%s2091_s20 + $0x560] sm:$0xff] %v841_v32  ;;  %1352 = vst [vmem:[%s2091_s20 + $0x568] sm:$0xff] %v842_v33  ;;  %v865_v17 = vmul.f32 %v2075_v1, %v353_v14  ;;  %v866_v18 = vmul.f32 %v2075_v1, %v354_v15  ;;  %v355_v19 = vld [vmem:[%s2068_s8 + $0x630] sm:$0xff]  ;;  %v356_v20 = vld [vmem:[%s2068_s8 + $0x638] sm:$0xff] }
  0xa3   : > { %1353 = vst [vmem:[%s2091_s20 + $0x570] sm:$0xff] %v843_v37  ;;  %1354 = vst [vmem:[%s2091_s20 + $0x578] sm:$0xff] %v844_v38  ;;  %v357_v21 = vld [vmem:[%s2068_s8 + $0x640] sm:$0xff]  ;;  %v867_v22 = vmul.f32 %v2075_v1, %v355_v19  ;;  %v868_v23 = vmul.f32 %v2075_v1, %v356_v20  ;;  %v358_v25 = vld [vmem:[%s2068_s8 + $0x648] sm:$0xff] }
  0xa4   : > { %1355 = vst [vmem:[%s2091_s20 + $0x580] sm:$0xff] %v845_v39  ;;  %1356 = vst [vmem:[%s2091_s20 + $0x588] sm:$0xff] %v846_v43  ;;  %v869_v24 = vmul.f32 %v2075_v1, %v357_v21  ;;  %v359_v26 = vld [vmem:[%s2068_s8 + $0x650] sm:$0xff]  ;;  %v360_v27 = vld [vmem:[%s2068_s8 + $0x658] sm:$0xff]  ;;  %v870_v28 = vmul.f32 %v2075_v1, %v358_v25 }
  0xa5   : > { %1357 = vst [vmem:[%s2091_s20 + $0x590] sm:$0xff] %v847_v44  ;;  %1358 = vst [vmem:[%s2091_s20 + $0x598] sm:$0xff] %v848_v45  ;;  %v871_v29 = vmul.f32 %v2075_v1, %v359_v26  ;;  %v872_v30 = vmul.f32 %v2075_v1, %v360_v27  ;;  %v361_v31 = vld [vmem:[%s2068_s8 + $0x660] sm:$0xff]  ;;  %v362_v32 = vld [vmem:[%s2068_s8 + $0x668] sm:$0xff] }
  0xa6   : > { %1359 = vst [vmem:[%s2091_s20 + $0x5a0] sm:$0xff] %v849_v49  ;;  %1360 = vst [vmem:[%s2091_s20 + $0x5a8] sm:$0xff] %v850_v50  ;;  %v363_v33 = vld [vmem:[%s2068_s8 + $0x670] sm:$0xff]  ;;  %v873_v34 = vmul.f32 %v2075_v1, %v361_v31  ;;  %v874_v35 = vmul.f32 %v2075_v1, %v362_v32  ;;  %v364_v37 = vld [vmem:[%s2068_s8 + $0x678] sm:$0xff] }
  0xa7   : > { %1361 = vst [vmem:[%s2091_s20 + $0x5b0] sm:$0xff] %v851_v51  ;;  %1362 = vst [vmem:[%s2091_s20 + $0x5b8] sm:$0xff] %v852_v55  ;;  %v875_v36 = vmul.f32 %v2075_v1, %v363_v33  ;;  %v365_v38 = vld [vmem:[%s2068_s8 + $0x680] sm:$0xff]  ;;  %v366_v39 = vld [vmem:[%s2068_s8 + $0x688] sm:$0xff]  ;;  %v876_v40 = vmul.f32 %v2075_v1, %v364_v37 }
  0xa8   : > { %1363 = vst [vmem:[%s2091_s20 + $0x5c0] sm:$0xff] %v853_v56  ;;  %1364 = vst [vmem:[%s2091_s20 + $0x5c8] sm:$0xff] %v854_v57  ;;  %v877_v41 = vmul.f32 %v2075_v1, %v365_v38  ;;  %v878_v42 = vmul.f32 %v2075_v1, %v366_v39  ;;  %v367_v43 = vld [vmem:[%s2068_s8 + $0x690] sm:$0xff]  ;;  %v368_v44 = vld [vmem:[%s2068_s8 + $0x698] sm:$0xff] }
  0xa9   : > { %1365 = vst [vmem:[%s2091_s20 + $0x5d0] sm:$0xff] %v855_v61  ;;  %1366 = vst [vmem:[%s2091_s20 + $0x5d8] sm:$0xff] %v856_v62  ;;  %v369_v45 = vld [vmem:[%s2068_s8 + $0x6a0] sm:$0xff]  ;;  %v879_v46 = vmul.f32 %v2075_v1, %v367_v43  ;;  %v880_v47 = vmul.f32 %v2075_v1, %v368_v44  ;;  %v370_v49 = vld [vmem:[%s2068_s8 + $0x6a8] sm:$0xff] }
  0xaa   : > { %1367 = vst [vmem:[%s2091_s20 + $0x5e0] sm:$0xff] %v857_v63  ;;  %1368 = vst [vmem:[%s2091_s20 + $0x5e8] sm:$0xff] %v858_v4  ;;  %v881_v48 = vmul.f32 %v2075_v1, %v369_v45  ;;  %v371_v50 = vld [vmem:[%s2068_s8 + $0x6b0] sm:$0xff]  ;;  %v372_v51 = vld [vmem:[%s2068_s8 + $0x6b8] sm:$0xff]  ;;  %v882_v52 = vmul.f32 %v2075_v1, %v370_v49 }
  0xab   : > { %1369 = vst [vmem:[%s2091_s20 + $0x5f0] sm:$0xff] %v859_v5  ;;  %1370 = vst [vmem:[%s2091_s20 + $0x5f8] sm:$0xff] %v860_v6  ;;  %v883_v53 = vmul.f32 %v2075_v1, %v371_v50  ;;  %v884_v54 = vmul.f32 %v2075_v1, %v372_v51  ;;  %v373_v55 = vld [vmem:[%s2068_s8 + $0x6c0] sm:$0xff]  ;;  %v374_v56 = vld [vmem:[%s2068_s8 + $0x6c8] sm:$0xff] }
  0xac   : > { %1371 = vst [vmem:[%s2091_s20 + $0x600] sm:$0xff] %v861_v10  ;;  %1372 = vst [vmem:[%s2091_s20 + $0x608] sm:$0xff] %v862_v11  ;;  %v375_v57 = vld [vmem:[%s2068_s8 + $0x6d0] sm:$0xff]  ;;  %v885_v58 = vmul.f32 %v2075_v1, %v373_v55  ;;  %v886_v59 = vmul.f32 %v2075_v1, %v374_v56  ;;  %v376_v61 = vld [vmem:[%s2068_s8 + $0x6d8] sm:$0xff] }
  0xad   : > { %1373 = vst [vmem:[%s2091_s20 + $0x610] sm:$0xff] %v863_v12  ;;  %1374 = vst [vmem:[%s2091_s20 + $0x618] sm:$0xff] %v864_v16  ;;  %v887_v60 = vmul.f32 %v2075_v1, %v375_v57  ;;  %v377_v62 = vld [vmem:[%s2068_s8 + $0x6e0] sm:$0xff]  ;;  %v378_v63 = vld [vmem:[%s2068_s8 + $0x6e8] sm:$0xff]  ;;  %v888_v0 = vmul.f32 %v2075_v1, %v376_v61 }
  0xae   : > { %1375 = vst [vmem:[%s2091_s20 + $0x620] sm:$0xff] %v865_v17  ;;  %1376 = vst [vmem:[%s2091_s20 + $0x628] sm:$0xff] %v866_v18  ;;  %v889_v2 = vmul.f32 %v2075_v1, %v377_v62  ;;  %v890_v3 = vmul.f32 %v2075_v1, %v378_v63  ;;  %v379_v4 = vld [vmem:[%s2068_s8 + $0x6f0] sm:$0xff]  ;;  %v380_v5 = vld [vmem:[%s2068_s8 + $0x6f8] sm:$0xff] }
  0xaf   : > { %1377 = vst [vmem:[%s2091_s20 + $0x630] sm:$0xff] %v867_v22  ;;  %1378 = vst [vmem:[%s2091_s20 + $0x638] sm:$0xff] %v868_v23  ;;  %v381_v6 = vld [vmem:[%s2068_s8 + $0x700] sm:$0xff]  ;;  %v891_v7 = vmul.f32 %v2075_v1, %v379_v4  ;;  %v892_v8 = vmul.f32 %v2075_v1, %v380_v5  ;;  %v382_v10 = vld [vmem:[%s2068_s8 + $0x708] sm:$0xff] }
  0xb0   : > { %1379 = vst [vmem:[%s2091_s20 + $0x640] sm:$0xff] %v869_v24  ;;  %1380 = vst [vmem:[%s2091_s20 + $0x648] sm:$0xff] %v870_v28  ;;  %v893_v9 = vmul.f32 %v2075_v1, %v381_v6  ;;  %v383_v11 = vld [vmem:[%s2068_s8 + $0x710] sm:$0xff]  ;;  %v384_v12 = vld [vmem:[%s2068_s8 + $0x718] sm:$0xff]  ;;  %v894_v13 = vmul.f32 %v2075_v1, %v382_v10 }
  0xb1   : > { %1381 = vst [vmem:[%s2091_s20 + $0x650] sm:$0xff] %v871_v29  ;;  %1382 = vst [vmem:[%s2091_s20 + $0x658] sm:$0xff] %v872_v30  ;;  %v895_v14 = vmul.f32 %v2075_v1, %v383_v11  ;;  %v896_v15 = vmul.f32 %v2075_v1, %v384_v12  ;;  %v385_v16 = vld [vmem:[%s2068_s8 + $0x720] sm:$0xff]  ;;  %v386_v17 = vld [vmem:[%s2068_s8 + $0x728] sm:$0xff] }
  0xb2   : > { %1383 = vst [vmem:[%s2091_s20 + $0x660] sm:$0xff] %v873_v34  ;;  %1384 = vst [vmem:[%s2091_s20 + $0x668] sm:$0xff] %v874_v35  ;;  %v387_v18 = vld [vmem:[%s2068_s8 + $0x730] sm:$0xff]  ;;  %v897_v19 = vmul.f32 %v2075_v1, %v385_v16  ;;  %v898_v20 = vmul.f32 %v2075_v1, %v386_v17  ;;  %v388_v22 = vld [vmem:[%s2068_s8 + $0x738] sm:$0xff] }
  0xb3   : > { %1385 = vst [vmem:[%s2091_s20 + $0x670] sm:$0xff] %v875_v36  ;;  %1386 = vst [vmem:[%s2091_s20 + $0x678] sm:$0xff] %v876_v40  ;;  %v899_v21 = vmul.f32 %v2075_v1, %v387_v18  ;;  %v389_v23 = vld [vmem:[%s2068_s8 + $0x740] sm:$0xff]  ;;  %v390_v24 = vld [vmem:[%s2068_s8 + $0x748] sm:$0xff]  ;;  %v900_v25 = vmul.f32 %v2075_v1, %v388_v22 }
  0xb4   : > { %1387 = vst [vmem:[%s2091_s20 + $0x680] sm:$0xff] %v877_v41  ;;  %1388 = vst [vmem:[%s2091_s20 + $0x688] sm:$0xff] %v878_v42  ;;  %v901_v26 = vmul.f32 %v2075_v1, %v389_v23  ;;  %v902_v27 = vmul.f32 %v2075_v1, %v390_v24  ;;  %v391_v28 = vld [vmem:[%s2068_s8 + $0x750] sm:$0xff]  ;;  %v392_v29 = vld [vmem:[%s2068_s8 + $0x758] sm:$0xff] }
  0xb5   : > { %1389 = vst [vmem:[%s2091_s20 + $0x690] sm:$0xff] %v879_v46  ;;  %1390 = vst [vmem:[%s2091_s20 + $0x698] sm:$0xff] %v880_v47  ;;  %v393_v30 = vld [vmem:[%s2068_s8 + $0x760] sm:$0xff]  ;;  %v903_v31 = vmul.f32 %v2075_v1, %v391_v28  ;;  %v904_v32 = vmul.f32 %v2075_v1, %v392_v29  ;;  %v394_v34 = vld [vmem:[%s2068_s8 + $0x768] sm:$0xff] }
  0xb6   : > { %1391 = vst [vmem:[%s2091_s20 + $0x6a0] sm:$0xff] %v881_v48  ;;  %1392 = vst [vmem:[%s2091_s20 + $0x6a8] sm:$0xff] %v882_v52  ;;  %v905_v33 = vmul.f32 %v2075_v1, %v393_v30  ;;  %v395_v35 = vld [vmem:[%s2068_s8 + $0x770] sm:$0xff]  ;;  %v396_v36 = vld [vmem:[%s2068_s8 + $0x778] sm:$0xff]  ;;  %v906_v37 = vmul.f32 %v2075_v1, %v394_v34 }
  0xb7   : > { %1393 = vst [vmem:[%s2091_s20 + $0x6b0] sm:$0xff] %v883_v53  ;;  %1394 = vst [vmem:[%s2091_s20 + $0x6b8] sm:$0xff] %v884_v54  ;;  %v907_v38 = vmul.f32 %v2075_v1, %v395_v35  ;;  %v908_v39 = vmul.f32 %v2075_v1, %v396_v36  ;;  %v397_v40 = vld [vmem:[%s2068_s8 + $0x780] sm:$0xff]  ;;  %v398_v41 = vld [vmem:[%s2068_s8 + $0x788] sm:$0xff] }
  0xb8   : > { %1395 = vst [vmem:[%s2091_s20 + $0x6c0] sm:$0xff] %v885_v58  ;;  %1396 = vst [vmem:[%s2091_s20 + $0x6c8] sm:$0xff] %v886_v59  ;;  %v399_v42 = vld [vmem:[%s2068_s8 + $0x790] sm:$0xff]  ;;  %v909_v43 = vmul.f32 %v2075_v1, %v397_v40  ;;  %v910_v44 = vmul.f32 %v2075_v1, %v398_v41  ;;  %v400_v46 = vld [vmem:[%s2068_s8 + $0x798] sm:$0xff] }
  0xb9   : > { %1397 = vst [vmem:[%s2091_s20 + $0x6d0] sm:$0xff] %v887_v60  ;;  %1398 = vst [vmem:[%s2091_s20 + $0x6d8] sm:$0xff] %v888_v0  ;;  %v911_v45 = vmul.f32 %v2075_v1, %v399_v42  ;;  %v401_v47 = vld [vmem:[%s2068_s8 + $0x7a0] sm:$0xff]  ;;  %v402_v48 = vld [vmem:[%s2068_s8 + $0x7a8] sm:$0xff]  ;;  %v912_v49 = vmul.f32 %v2075_v1, %v400_v46 }
  0xba   : > { %1399 = vst [vmem:[%s2091_s20 + $0x6e0] sm:$0xff] %v889_v2  ;;  %1400 = vst [vmem:[%s2091_s20 + $0x6e8] sm:$0xff] %v890_v3  ;;  %v913_v50 = vmul.f32 %v2075_v1, %v401_v47  ;;  %v914_v51 = vmul.f32 %v2075_v1, %v402_v48  ;;  %v403_v52 = vld [vmem:[%s2068_s8 + $0x7b0] sm:$0xff]  ;;  %v404_v53 = vld [vmem:[%s2068_s8 + $0x7b8] sm:$0xff] }
  0xbb   : > { %1401 = vst [vmem:[%s2091_s20 + $0x6f0] sm:$0xff] %v891_v7  ;;  %1402 = vst [vmem:[%s2091_s20 + $0x6f8] sm:$0xff] %v892_v8  ;;  %v405_v54 = vld [vmem:[%s2068_s8 + $0x7c0] sm:$0xff]  ;;  %v915_v55 = vmul.f32 %v2075_v1, %v403_v52  ;;  %v916_v56 = vmul.f32 %v2075_v1, %v404_v53  ;;  %v406_v58 = vld [vmem:[%s2068_s8 + $0x7c8] sm:$0xff] }
  0xbc   : > { %1403 = vst [vmem:[%s2091_s20 + $0x700] sm:$0xff] %v893_v9  ;;  %1404 = vst [vmem:[%s2091_s20 + $0x708] sm:$0xff] %v894_v13  ;;  %v917_v57 = vmul.f32 %v2075_v1, %v405_v54  ;;  %v407_v59 = vld [vmem:[%s2068_s8 + $0x7d0] sm:$0xff]  ;;  %v408_v60 = vld [vmem:[%s2068_s8 + $0x7d8] sm:$0xff]  ;;  %v918_v61 = vmul.f32 %v2075_v1, %v406_v58 }
  0xbd   : > { %1405 = vst [vmem:[%s2091_s20 + $0x710] sm:$0xff] %v895_v14  ;;  %1406 = vst [vmem:[%s2091_s20 + $0x718] sm:$0xff] %v896_v15  ;;  %v919_v62 = vmul.f32 %v2075_v1, %v407_v59  ;;  %v920_v63 = vmul.f32 %v2075_v1, %v408_v60  ;;  %v409_v0 = vld [vmem:[%s2068_s8 + $0x7e0] sm:$0xff]  ;;  %v410_v2 = vld [vmem:[%s2068_s8 + $0x7e8] sm:$0xff] }
  0xbe   : > { %1407 = vst [vmem:[%s2091_s20 + $0x720] sm:$0xff] %v897_v19  ;;  %1408 = vst [vmem:[%s2091_s20 + $0x728] sm:$0xff] %v898_v20  ;;  %v411_v3 = vld [vmem:[%s2068_s8 + $0x7f0] sm:$0xff]  ;;  %v921_v4 = vmul.f32 %v2075_v1, %v409_v0  ;;  %v922_v5 = vmul.f32 %v2075_v1, %v410_v2  ;;  %v412_v7 = vld [vmem:[%s2068_s8 + $0x7f8] sm:$0xff] }
  0xbf   : > { %1409 = vst [vmem:[%s2091_s20 + $0x730] sm:$0xff] %v899_v21  ;;  %1410 = vst [vmem:[%s2091_s20 + $0x738] sm:$0xff] %v900_v25  ;;  %v923_v6 = vmul.f32 %v2075_v1, %v411_v3  ;;  %v413_v8 = vld [vmem:[%s2068_s8 + $0x800] sm:$0xff]  ;;  %v414_v9 = vld [vmem:[%s2068_s8 + $0x808] sm:$0xff]  ;;  %v924_v10 = vmul.f32 %v2075_v1, %v412_v7 }
  0xc0   : > { %1411 = vst [vmem:[%s2091_s20 + $0x740] sm:$0xff] %v901_v26  ;;  %1412 = vst [vmem:[%s2091_s20 + $0x748] sm:$0xff] %v902_v27  ;;  %v925_v11 = vmul.f32 %v2075_v1, %v413_v8  ;;  %v926_v12 = vmul.f32 %v2075_v1, %v414_v9  ;;  %v415_v13 = vld [vmem:[%s2068_s8 + $0x810] sm:$0xff]  ;;  %v416_v14 = vld [vmem:[%s2068_s8 + $0x818] sm:$0xff] }
  0xc1   : > { %1413 = vst [vmem:[%s2091_s20 + $0x750] sm:$0xff] %v903_v31  ;;  %1414 = vst [vmem:[%s2091_s20 + $0x758] sm:$0xff] %v904_v32  ;;  %v417_v15 = vld [vmem:[%s2068_s8 + $0x820] sm:$0xff]  ;;  %v927_v16 = vmul.f32 %v2075_v1, %v415_v13  ;;  %v928_v17 = vmul.f32 %v2075_v1, %v416_v14  ;;  %v418_v19 = vld [vmem:[%s2068_s8 + $0x828] sm:$0xff] }
  0xc2   : > { %1415 = vst [vmem:[%s2091_s20 + $0x760] sm:$0xff] %v905_v33  ;;  %1416 = vst [vmem:[%s2091_s20 + $0x768] sm:$0xff] %v906_v37  ;;  %v929_v18 = vmul.f32 %v2075_v1, %v417_v15  ;;  %v419_v20 = vld [vmem:[%s2068_s8 + $0x830] sm:$0xff]  ;;  %v420_v21 = vld [vmem:[%s2068_s8 + $0x838] sm:$0xff]  ;;  %v930_v22 = vmul.f32 %v2075_v1, %v418_v19 }
  0xc3   : > { %1417 = vst [vmem:[%s2091_s20 + $0x770] sm:$0xff] %v907_v38  ;;  %1418 = vst [vmem:[%s2091_s20 + $0x778] sm:$0xff] %v908_v39  ;;  %v931_v23 = vmul.f32 %v2075_v1, %v419_v20  ;;  %v932_v24 = vmul.f32 %v2075_v1, %v420_v21  ;;  %v421_v25 = vld [vmem:[%s2068_s8 + $0x840] sm:$0xff]  ;;  %v422_v26 = vld [vmem:[%s2068_s8 + $0x848] sm:$0xff] }
  0xc4   : > { %1419 = vst [vmem:[%s2091_s20 + $0x780] sm:$0xff] %v909_v43  ;;  %1420 = vst [vmem:[%s2091_s20 + $0x788] sm:$0xff] %v910_v44  ;;  %v423_v27 = vld [vmem:[%s2068_s8 + $0x850] sm:$0xff]  ;;  %v933_v28 = vmul.f32 %v2075_v1, %v421_v25  ;;  %v934_v29 = vmul.f32 %v2075_v1, %v422_v26  ;;  %v424_v31 = vld [vmem:[%s2068_s8 + $0x858] sm:$0xff] }
  0xc5   : > { %1421 = vst [vmem:[%s2091_s20 + $0x790] sm:$0xff] %v911_v45  ;;  %1422 = vst [vmem:[%s2091_s20 + $0x798] sm:$0xff] %v912_v49  ;;  %v935_v30 = vmul.f32 %v2075_v1, %v423_v27  ;;  %v425_v32 = vld [vmem:[%s2068_s8 + $0x860] sm:$0xff]  ;;  %v426_v33 = vld [vmem:[%s2068_s8 + $0x868] sm:$0xff]  ;;  %v936_v34 = vmul.f32 %v2075_v1, %v424_v31 }
  0xc6   : > { %1423 = vst [vmem:[%s2091_s20 + $0x7a0] sm:$0xff] %v913_v50  ;;  %1424 = vst [vmem:[%s2091_s20 + $0x7a8] sm:$0xff] %v914_v51  ;;  %v937_v35 = vmul.f32 %v2075_v1, %v425_v32  ;;  %v938_v36 = vmul.f32 %v2075_v1, %v426_v33  ;;  %v427_v37 = vld [vmem:[%s2068_s8 + $0x870] sm:$0xff]  ;;  %v428_v38 = vld [vmem:[%s2068_s8 + $0x878] sm:$0xff] }
  0xc7   : > { %1425 = vst [vmem:[%s2091_s20 + $0x7b0] sm:$0xff] %v915_v55  ;;  %1426 = vst [vmem:[%s2091_s20 + $0x7b8] sm:$0xff] %v916_v56  ;;  %v429_v39 = vld [vmem:[%s2068_s8 + $0x880] sm:$0xff]  ;;  %v939_v40 = vmul.f32 %v2075_v1, %v427_v37  ;;  %v940_v41 = vmul.f32 %v2075_v1, %v428_v38  ;;  %v430_v43 = vld [vmem:[%s2068_s8 + $0x888] sm:$0xff] }
  0xc8   : > { %1427 = vst [vmem:[%s2091_s20 + $0x7c0] sm:$0xff] %v917_v57  ;;  %1428 = vst [vmem:[%s2091_s20 + $0x7c8] sm:$0xff] %v918_v61  ;;  %v941_v42 = vmul.f32 %v2075_v1, %v429_v39  ;;  %v431_v44 = vld [vmem:[%s2068_s8 + $0x890] sm:$0xff]  ;;  %v432_v45 = vld [vmem:[%s2068_s8 + $0x898] sm:$0xff]  ;;  %v942_v46 = vmul.f32 %v2075_v1, %v430_v43 }
  0xc9   : > { %1429 = vst [vmem:[%s2091_s20 + $0x7d0] sm:$0xff] %v919_v62  ;;  %1430 = vst [vmem:[%s2091_s20 + $0x7d8] sm:$0xff] %v920_v63  ;;  %v943_v47 = vmul.f32 %v2075_v1, %v431_v44  ;;  %v944_v48 = vmul.f32 %v2075_v1, %v432_v45  ;;  %v433_v49 = vld [vmem:[%s2068_s8 + $0x8a0] sm:$0xff]  ;;  %v434_v50 = vld [vmem:[%s2068_s8 + $0x8a8] sm:$0xff] }
  0xca   : > { %1431 = vst [vmem:[%s2091_s20 + $0x7e0] sm:$0xff] %v921_v4  ;;  %1432 = vst [vmem:[%s2091_s20 + $0x7e8] sm:$0xff] %v922_v5  ;;  %v435_v51 = vld [vmem:[%s2068_s8 + $0x8b0] sm:$0xff]  ;;  %v945_v52 = vmul.f32 %v2075_v1, %v433_v49  ;;  %v946_v53 = vmul.f32 %v2075_v1, %v434_v50  ;;  %v436_v55 = vld [vmem:[%s2068_s8 + $0x8b8] sm:$0xff] }
  0xcb   : > { %1433 = vst [vmem:[%s2091_s20 + $0x7f0] sm:$0xff] %v923_v6  ;;  %1434 = vst [vmem:[%s2091_s20 + $0x7f8] sm:$0xff] %v924_v10  ;;  %v947_v54 = vmul.f32 %v2075_v1, %v435_v51  ;;  %v437_v56 = vld [vmem:[%s2068_s8 + $0x8c0] sm:$0xff]  ;;  %v438_v57 = vld [vmem:[%s2068_s8 + $0x8c8] sm:$0xff]  ;;  %v948_v58 = vmul.f32 %v2075_v1, %v436_v55 }
  0xcc   : > { %1435 = vst [vmem:[%s2091_s20 + $0x800] sm:$0xff] %v925_v11  ;;  %1436 = vst [vmem:[%s2091_s20 + $0x808] sm:$0xff] %v926_v12  ;;  %v949_v59 = vmul.f32 %v2075_v1, %v437_v56  ;;  %v950_v60 = vmul.f32 %v2075_v1, %v438_v57  ;;  %v439_v61 = vld [vmem:[%s2068_s8 + $0x8d0] sm:$0xff]  ;;  %v440_v62 = vld [vmem:[%s2068_s8 + $0x8d8] sm:$0xff] }
  0xcd   : > { %1437 = vst [vmem:[%s2091_s20 + $0x810] sm:$0xff] %v927_v16  ;;  %1438 = vst [vmem:[%s2091_s20 + $0x818] sm:$0xff] %v928_v17  ;;  %v441_v63 = vld [vmem:[%s2068_s8 + $0x8e0] sm:$0xff]  ;;  %v951_v0 = vmul.f32 %v2075_v1, %v439_v61  ;;  %v952_v2 = vmul.f32 %v2075_v1, %v440_v62  ;;  %v442_v4 = vld [vmem:[%s2068_s8 + $0x8e8] sm:$0xff] }
  0xce   : > { %1439 = vst [vmem:[%s2091_s20 + $0x820] sm:$0xff] %v929_v18  ;;  %1440 = vst [vmem:[%s2091_s20 + $0x828] sm:$0xff] %v930_v22  ;;  %v953_v3 = vmul.f32 %v2075_v1, %v441_v63  ;;  %v443_v5 = vld [vmem:[%s2068_s8 + $0x8f0] sm:$0xff]  ;;  %v444_v6 = vld [vmem:[%s2068_s8 + $0x8f8] sm:$0xff]  ;;  %v954_v7 = vmul.f32 %v2075_v1, %v442_v4 }
  0xcf   : > { %1441 = vst [vmem:[%s2091_s20 + $0x830] sm:$0xff] %v931_v23  ;;  %1442 = vst [vmem:[%s2091_s20 + $0x838] sm:$0xff] %v932_v24  ;;  %v955_v8 = vmul.f32 %v2075_v1, %v443_v5  ;;  %v956_v9 = vmul.f32 %v2075_v1, %v444_v6  ;;  %v445_v10 = vld [vmem:[%s2068_s8 + $0x900] sm:$0xff]  ;;  %v446_v11 = vld [vmem:[%s2068_s8 + $0x908] sm:$0xff] }
  0xd0   : > { %1443 = vst [vmem:[%s2091_s20 + $0x840] sm:$0xff] %v933_v28  ;;  %1444 = vst [vmem:[%s2091_s20 + $0x848] sm:$0xff] %v934_v29  ;;  %v447_v12 = vld [vmem:[%s2068_s8 + $0x910] sm:$0xff]  ;;  %v957_v13 = vmul.f32 %v2075_v1, %v445_v10  ;;  %v958_v14 = vmul.f32 %v2075_v1, %v446_v11  ;;  %v448_v16 = vld [vmem:[%s2068_s8 + $0x918] sm:$0xff] }
  0xd1   : > { %1445 = vst [vmem:[%s2091_s20 + $0x850] sm:$0xff] %v935_v30  ;;  %1446 = vst [vmem:[%s2091_s20 + $0x858] sm:$0xff] %v936_v34  ;;  %v959_v15 = vmul.f32 %v2075_v1, %v447_v12  ;;  %v449_v17 = vld [vmem:[%s2068_s8 + $0x920] sm:$0xff]  ;;  %v450_v18 = vld [vmem:[%s2068_s8 + $0x928] sm:$0xff]  ;;  %v960_v19 = vmul.f32 %v2075_v1, %v448_v16 }
  0xd2   : > { %1447 = vst [vmem:[%s2091_s20 + $0x860] sm:$0xff] %v937_v35  ;;  %1448 = vst [vmem:[%s2091_s20 + $0x868] sm:$0xff] %v938_v36  ;;  %v961_v20 = vmul.f32 %v2075_v1, %v449_v17  ;;  %v962_v21 = vmul.f32 %v2075_v1, %v450_v18  ;;  %v451_v22 = vld [vmem:[%s2068_s8 + $0x930] sm:$0xff]  ;;  %v452_v23 = vld [vmem:[%s2068_s8 + $0x938] sm:$0xff] }
  0xd3   : > { %1449 = vst [vmem:[%s2091_s20 + $0x870] sm:$0xff] %v939_v40  ;;  %1450 = vst [vmem:[%s2091_s20 + $0x878] sm:$0xff] %v940_v41  ;;  %v453_v24 = vld [vmem:[%s2068_s8 + $0x940] sm:$0xff]  ;;  %v963_v25 = vmul.f32 %v2075_v1, %v451_v22  ;;  %v964_v26 = vmul.f32 %v2075_v1, %v452_v23  ;;  %v454_v28 = vld [vmem:[%s2068_s8 + $0x948] sm:$0xff] }
  0xd4   : > { %1451 = vst [vmem:[%s2091_s20 + $0x880] sm:$0xff] %v941_v42  ;;  %1452 = vst [vmem:[%s2091_s20 + $0x888] sm:$0xff] %v942_v46  ;;  %v965_v27 = vmul.f32 %v2075_v1, %v453_v24  ;;  %v455_v29 = vld [vmem:[%s2068_s8 + $0x950] sm:$0xff]  ;;  %v456_v30 = vld [vmem:[%s2068_s8 + $0x958] sm:$0xff]  ;;  %v966_v31 = vmul.f32 %v2075_v1, %v454_v28 }
  0xd5   : > { %1453 = vst [vmem:[%s2091_s20 + $0x890] sm:$0xff] %v943_v47  ;;  %1454 = vst [vmem:[%s2091_s20 + $0x898] sm:$0xff] %v944_v48  ;;  %v967_v32 = vmul.f32 %v2075_v1, %v455_v29  ;;  %v968_v33 = vmul.f32 %v2075_v1, %v456_v30  ;;  %v457_v34 = vld [vmem:[%s2068_s8 + $0x960] sm:$0xff]  ;;  %v458_v35 = vld [vmem:[%s2068_s8 + $0x968] sm:$0xff] }
  0xd6   : > { %1455 = vst [vmem:[%s2091_s20 + $0x8a0] sm:$0xff] %v945_v52  ;;  %1456 = vst [vmem:[%s2091_s20 + $0x8a8] sm:$0xff] %v946_v53  ;;  %v459_v36 = vld [vmem:[%s2068_s8 + $0x970] sm:$0xff]  ;;  %v969_v37 = vmul.f32 %v2075_v1, %v457_v34  ;;  %v970_v38 = vmul.f32 %v2075_v1, %v458_v35  ;;  %v460_v40 = vld [vmem:[%s2068_s8 + $0x978] sm:$0xff] }
  0xd7   : > { %1457 = vst [vmem:[%s2091_s20 + $0x8b0] sm:$0xff] %v947_v54  ;;  %1458 = vst [vmem:[%s2091_s20 + $0x8b8] sm:$0xff] %v948_v58  ;;  %v971_v39 = vmul.f32 %v2075_v1, %v459_v36  ;;  %v461_v41 = vld [vmem:[%s2068_s8 + $0x980] sm:$0xff]  ;;  %v462_v42 = vld [vmem:[%s2068_s8 + $0x988] sm:$0xff]  ;;  %v972_v43 = vmul.f32 %v2075_v1, %v460_v40 }
  0xd8   : > { %1459 = vst [vmem:[%s2091_s20 + $0x8c0] sm:$0xff] %v949_v59  ;;  %1460 = vst [vmem:[%s2091_s20 + $0x8c8] sm:$0xff] %v950_v60  ;;  %v973_v44 = vmul.f32 %v2075_v1, %v461_v41  ;;  %v974_v45 = vmul.f32 %v2075_v1, %v462_v42  ;;  %v463_v46 = vld [vmem:[%s2068_s8 + $0x990] sm:$0xff]  ;;  %v464_v47 = vld [vmem:[%s2068_s8 + $0x998] sm:$0xff] }
  0xd9   : > { %1461 = vst [vmem:[%s2091_s20 + $0x8d0] sm:$0xff] %v951_v0  ;;  %1462 = vst [vmem:[%s2091_s20 + $0x8d8] sm:$0xff] %v952_v2  ;;  %v465_v48 = vld [vmem:[%s2068_s8 + $0x9a0] sm:$0xff]  ;;  %v975_v49 = vmul.f32 %v2075_v1, %v463_v46  ;;  %v976_v50 = vmul.f32 %v2075_v1, %v464_v47  ;;  %v466_v52 = vld [vmem:[%s2068_s8 + $0x9a8] sm:$0xff] }
  0xda   : > { %1463 = vst [vmem:[%s2091_s20 + $0x8e0] sm:$0xff] %v953_v3  ;;  %1464 = vst [vmem:[%s2091_s20 + $0x8e8] sm:$0xff] %v954_v7  ;;  %v977_v51 = vmul.f32 %v2075_v1, %v465_v48  ;;  %v467_v53 = vld [vmem:[%s2068_s8 + $0x9b0] sm:$0xff]  ;;  %v468_v54 = vld [vmem:[%s2068_s8 + $0x9b8] sm:$0xff]  ;;  %v978_v55 = vmul.f32 %v2075_v1, %v466_v52 }
  0xdb   : > { %1465 = vst [vmem:[%s2091_s20 + $0x8f0] sm:$0xff] %v955_v8  ;;  %1466 = vst [vmem:[%s2091_s20 + $0x8f8] sm:$0xff] %v956_v9  ;;  %v979_v56 = vmul.f32 %v2075_v1, %v467_v53  ;;  %v980_v57 = vmul.f32 %v2075_v1, %v468_v54  ;;  %v469_v58 = vld [vmem:[%s2068_s8 + $0x9c0] sm:$0xff]  ;;  %v470_v59 = vld [vmem:[%s2068_s8 + $0x9c8] sm:$0xff] }
  0xdc   : > { %1467 = vst [vmem:[%s2091_s20 + $0x900] sm:$0xff] %v957_v13  ;;  %1468 = vst [vmem:[%s2091_s20 + $0x908] sm:$0xff] %v958_v14  ;;  %v471_v60 = vld [vmem:[%s2068_s8 + $0x9d0] sm:$0xff]  ;;  %v981_v61 = vmul.f32 %v2075_v1, %v469_v58  ;;  %v982_v62 = vmul.f32 %v2075_v1, %v470_v59  ;;  %v472_v0 = vld [vmem:[%s2068_s8 + $0x9d8] sm:$0xff] }
  0xdd   : > { %1469 = vst [vmem:[%s2091_s20 + $0x910] sm:$0xff] %v959_v15  ;;  %1470 = vst [vmem:[%s2091_s20 + $0x918] sm:$0xff] %v960_v19  ;;  %v983_v63 = vmul.f32 %v2075_v1, %v471_v60  ;;  %v473_v2 = vld [vmem:[%s2068_s8 + $0x9e0] sm:$0xff]  ;;  %v474_v3 = vld [vmem:[%s2068_s8 + $0x9e8] sm:$0xff]  ;;  %v984_v4 = vmul.f32 %v2075_v1, %v472_v0 }
  0xde   : > { %1471 = vst [vmem:[%s2091_s20 + $0x920] sm:$0xff] %v961_v20  ;;  %1472 = vst [vmem:[%s2091_s20 + $0x928] sm:$0xff] %v962_v21  ;;  %v985_v5 = vmul.f32 %v2075_v1, %v473_v2  ;;  %v986_v6 = vmul.f32 %v2075_v1, %v474_v3  ;;  %v475_v7 = vld [vmem:[%s2068_s8 + $0x9f0] sm:$0xff]  ;;  %v476_v8 = vld [vmem:[%s2068_s8 + $0x9f8] sm:$0xff] }
  0xdf   : > { %1473 = vst [vmem:[%s2091_s20 + $0x930] sm:$0xff] %v963_v25  ;;  %1474 = vst [vmem:[%s2091_s20 + $0x938] sm:$0xff] %v964_v26  ;;  %v477_v9 = vld [vmem:[%s2068_s8 + $0xa00] sm:$0xff]  ;;  %v987_v10 = vmul.f32 %v2075_v1, %v475_v7  ;;  %v988_v11 = vmul.f32 %v2075_v1, %v476_v8  ;;  %v478_v13 = vld [vmem:[%s2068_s8 + $0xa08] sm:$0xff] }
  0xe0   : > { %1475 = vst [vmem:[%s2091_s20 + $0x940] sm:$0xff] %v965_v27  ;;  %1476 = vst [vmem:[%s2091_s20 + $0x948] sm:$0xff] %v966_v31  ;;  %v989_v12 = vmul.f32 %v2075_v1, %v477_v9  ;;  %v479_v14 = vld [vmem:[%s2068_s8 + $0xa10] sm:$0xff]  ;;  %v480_v15 = vld [vmem:[%s2068_s8 + $0xa18] sm:$0xff]  ;;  %v990_v16 = vmul.f32 %v2075_v1, %v478_v13 }
  0xe1   : > { %1477 = vst [vmem:[%s2091_s20 + $0x950] sm:$0xff] %v967_v32  ;;  %1478 = vst [vmem:[%s2091_s20 + $0x958] sm:$0xff] %v968_v33  ;;  %v991_v17 = vmul.f32 %v2075_v1, %v479_v14  ;;  %v992_v18 = vmul.f32 %v2075_v1, %v480_v15  ;;  %v481_v19 = vld [vmem:[%s2068_s8 + $0xa20] sm:$0xff]  ;;  %v482_v20 = vld [vmem:[%s2068_s8 + $0xa28] sm:$0xff] }
  0xe2   : > { %1479 = vst [vmem:[%s2091_s20 + $0x960] sm:$0xff] %v969_v37  ;;  %1480 = vst [vmem:[%s2091_s20 + $0x968] sm:$0xff] %v970_v38  ;;  %v483_v21 = vld [vmem:[%s2068_s8 + $0xa30] sm:$0xff]  ;;  %v993_v22 = vmul.f32 %v2075_v1, %v481_v19  ;;  %v994_v23 = vmul.f32 %v2075_v1, %v482_v20  ;;  %v484_v25 = vld [vmem:[%s2068_s8 + $0xa38] sm:$0xff] }
  0xe3   : > { %1481 = vst [vmem:[%s2091_s20 + $0x970] sm:$0xff] %v971_v39  ;;  %1482 = vst [vmem:[%s2091_s20 + $0x978] sm:$0xff] %v972_v43  ;;  %v995_v24 = vmul.f32 %v2075_v1, %v483_v21  ;;  %v485_v26 = vld [vmem:[%s2068_s8 + $0xa40] sm:$0xff]  ;;  %v486_v27 = vld [vmem:[%s2068_s8 + $0xa48] sm:$0xff]  ;;  %v996_v28 = vmul.f32 %v2075_v1, %v484_v25 }
  0xe4   : > { %1483 = vst [vmem:[%s2091_s20 + $0x980] sm:$0xff] %v973_v44  ;;  %1484 = vst [vmem:[%s2091_s20 + $0x988] sm:$0xff] %v974_v45  ;;  %v997_v29 = vmul.f32 %v2075_v1, %v485_v26  ;;  %v998_v30 = vmul.f32 %v2075_v1, %v486_v27  ;;  %v487_v31 = vld [vmem:[%s2068_s8 + $0xa50] sm:$0xff]  ;;  %v488_v32 = vld [vmem:[%s2068_s8 + $0xa58] sm:$0xff] }
  0xe5   : > { %1485 = vst [vmem:[%s2091_s20 + $0x990] sm:$0xff] %v975_v49  ;;  %1486 = vst [vmem:[%s2091_s20 + $0x998] sm:$0xff] %v976_v50  ;;  %v489_v33 = vld [vmem:[%s2068_s8 + $0xa60] sm:$0xff]  ;;  %v999_v34 = vmul.f32 %v2075_v1, %v487_v31  ;;  %v1000_v35 = vmul.f32 %v2075_v1, %v488_v32  ;;  %v490_v37 = vld [vmem:[%s2068_s8 + $0xa68] sm:$0xff] }
  0xe6   : > { %1487 = vst [vmem:[%s2091_s20 + $0x9a0] sm:$0xff] %v977_v51  ;;  %1488 = vst [vmem:[%s2091_s20 + $0x9a8] sm:$0xff] %v978_v55  ;;  %v1001_v36 = vmul.f32 %v2075_v1, %v489_v33  ;;  %v491_v38 = vld [vmem:[%s2068_s8 + $0xa70] sm:$0xff]  ;;  %v492_v39 = vld [vmem:[%s2068_s8 + $0xa78] sm:$0xff]  ;;  %v1002_v40 = vmul.f32 %v2075_v1, %v490_v37 }
  0xe7   : > { %1489 = vst [vmem:[%s2091_s20 + $0x9b0] sm:$0xff] %v979_v56  ;;  %1490 = vst [vmem:[%s2091_s20 + $0x9b8] sm:$0xff] %v980_v57  ;;  %v1003_v41 = vmul.f32 %v2075_v1, %v491_v38  ;;  %v1004_v42 = vmul.f32 %v2075_v1, %v492_v39  ;;  %v493_v43 = vld [vmem:[%s2068_s8 + $0xa80] sm:$0xff]  ;;  %v494_v44 = vld [vmem:[%s2068_s8 + $0xa88] sm:$0xff] }
  0xe8   : > { %1491 = vst [vmem:[%s2091_s20 + $0x9c0] sm:$0xff] %v981_v61  ;;  %1492 = vst [vmem:[%s2091_s20 + $0x9c8] sm:$0xff] %v982_v62  ;;  %v495_v45 = vld [vmem:[%s2068_s8 + $0xa90] sm:$0xff]  ;;  %v1005_v46 = vmul.f32 %v2075_v1, %v493_v43  ;;  %v1006_v47 = vmul.f32 %v2075_v1, %v494_v44  ;;  %v496_v49 = vld [vmem:[%s2068_s8 + $0xa98] sm:$0xff] }
  0xe9   : > { %1493 = vst [vmem:[%s2091_s20 + $0x9d0] sm:$0xff] %v983_v63  ;;  %1494 = vst [vmem:[%s2091_s20 + $0x9d8] sm:$0xff] %v984_v4  ;;  %v1007_v48 = vmul.f32 %v2075_v1, %v495_v45  ;;  %v497_v50 = vld [vmem:[%s2068_s8 + $0xaa0] sm:$0xff]  ;;  %v498_v51 = vld [vmem:[%s2068_s8 + $0xaa8] sm:$0xff]  ;;  %v1008_v52 = vmul.f32 %v2075_v1, %v496_v49 }
  0xea   : > { %1495 = vst [vmem:[%s2091_s20 + $0x9e0] sm:$0xff] %v985_v5  ;;  %1496 = vst [vmem:[%s2091_s20 + $0x9e8] sm:$0xff] %v986_v6  ;;  %v1009_v53 = vmul.f32 %v2075_v1, %v497_v50  ;;  %v1010_v54 = vmul.f32 %v2075_v1, %v498_v51  ;;  %v499_v55 = vld [vmem:[%s2068_s8 + $0xab0] sm:$0xff]  ;;  %v500_v56 = vld [vmem:[%s2068_s8 + $0xab8] sm:$0xff] }
  0xeb   : > { %1497 = vst [vmem:[%s2091_s20 + $0x9f0] sm:$0xff] %v987_v10  ;;  %1498 = vst [vmem:[%s2091_s20 + $0x9f8] sm:$0xff] %v988_v11  ;;  %v501_v57 = vld [vmem:[%s2068_s8 + $0xac0] sm:$0xff]  ;;  %v1011_v58 = vmul.f32 %v2075_v1, %v499_v55  ;;  %v1012_v59 = vmul.f32 %v2075_v1, %v500_v56  ;;  %v502_v61 = vld [vmem:[%s2068_s8 + $0xac8] sm:$0xff] }
  0xec   : > { %1499 = vst [vmem:[%s2091_s20 + $0xa00] sm:$0xff] %v989_v12  ;;  %1500 = vst [vmem:[%s2091_s20 + $0xa08] sm:$0xff] %v990_v16  ;;  %v1013_v60 = vmul.f32 %v2075_v1, %v501_v57  ;;  %v503_v62 = vld [vmem:[%s2068_s8 + $0xad0] sm:$0xff]  ;;  %v504_v63 = vld [vmem:[%s2068_s8 + $0xad8] sm:$0xff]  ;;  %v1014_v0 = vmul.f32 %v2075_v1, %v502_v61 }
  0xed   : > { %1501 = vst [vmem:[%s2091_s20 + $0xa10] sm:$0xff] %v991_v17  ;;  %1502 = vst [vmem:[%s2091_s20 + $0xa18] sm:$0xff] %v992_v18  ;;  %v1015_v2 = vmul.f32 %v2075_v1, %v503_v62  ;;  %v1016_v3 = vmul.f32 %v2075_v1, %v504_v63  ;;  %v505_v4 = vld [vmem:[%s2068_s8 + $0xae0] sm:$0xff]  ;;  %v506_v5 = vld [vmem:[%s2068_s8 + $0xae8] sm:$0xff] }
  0xee   : > { %1503 = vst [vmem:[%s2091_s20 + $0xa20] sm:$0xff] %v993_v22  ;;  %1504 = vst [vmem:[%s2091_s20 + $0xa28] sm:$0xff] %v994_v23  ;;  %v507_v6 = vld [vmem:[%s2068_s8 + $0xaf0] sm:$0xff]  ;;  %v1017_v7 = vmul.f32 %v2075_v1, %v505_v4  ;;  %v1018_v8 = vmul.f32 %v2075_v1, %v506_v5  ;;  %v508_v10 = vld [vmem:[%s2068_s8 + $0xaf8] sm:$0xff] }
  0xef   : > { %1505 = vst [vmem:[%s2091_s20 + $0xa30] sm:$0xff] %v995_v24  ;;  %1506 = vst [vmem:[%s2091_s20 + $0xa38] sm:$0xff] %v996_v28  ;;  %v1019_v9 = vmul.f32 %v2075_v1, %v507_v6  ;;  %v509_v11 = vld [vmem:[%s2068_s8 + $0xb00] sm:$0xff]  ;;  %v510_v12 = vld [vmem:[%s2068_s8 + $0xb08] sm:$0xff]  ;;  %v1020_v13 = vmul.f32 %v2075_v1, %v508_v10 }
  0xf0   : > { %1507 = vst [vmem:[%s2091_s20 + $0xa40] sm:$0xff] %v997_v29  ;;  %1508 = vst [vmem:[%s2091_s20 + $0xa48] sm:$0xff] %v998_v30  ;;  %v1021_v14 = vmul.f32 %v2075_v1, %v509_v11  ;;  %v1022_v15 = vmul.f32 %v2075_v1, %v510_v12  ;;  %v511_v16 = vld [vmem:[%s2068_s8 + $0xb10] sm:$0xff]  ;;  %v512_v17 = vld [vmem:[%s2068_s8 + $0xb18] sm:$0xff] }
  0xf1   : > { %1509 = vst [vmem:[%s2091_s20 + $0xa50] sm:$0xff] %v999_v34  ;;  %1510 = vst [vmem:[%s2091_s20 + $0xa58] sm:$0xff] %v1000_v35  ;;  %v513_v18 = vld [vmem:[%s2068_s8 + $0xb20] sm:$0xff]  ;;  %v1023_v19 = vmul.f32 %v2075_v1, %v511_v16  ;;  %v1024_v20 = vmul.f32 %v2075_v1, %v512_v17  ;;  %v514_v22 = vld [vmem:[%s2068_s8 + $0xb28] sm:$0xff] }
  0xf2   : > { %1511 = vst [vmem:[%s2091_s20 + $0xa60] sm:$0xff] %v1001_v36  ;;  %1512 = vst [vmem:[%s2091_s20 + $0xa68] sm:$0xff] %v1002_v40  ;;  %v1025_v21 = vmul.f32 %v2075_v1, %v513_v18  ;;  %v515_v23 = vld [vmem:[%s2068_s8 + $0xb30] sm:$0xff]  ;;  %v516_v24 = vld [vmem:[%s2068_s8 + $0xb38] sm:$0xff]  ;;  %v1026_v25 = vmul.f32 %v2075_v1, %v514_v22 }
  0xf3   : > { %1513 = vst [vmem:[%s2091_s20 + $0xa70] sm:$0xff] %v1003_v41  ;;  %1514 = vst [vmem:[%s2091_s20 + $0xa78] sm:$0xff] %v1004_v42  ;;  %v1027_v26 = vmul.f32 %v2075_v1, %v515_v23  ;;  %v1028_v27 = vmul.f32 %v2075_v1, %v516_v24  ;;  %v517_v28 = vld [vmem:[%s2068_s8 + $0xb40] sm:$0xff]  ;;  %v518_v29 = vld [vmem:[%s2068_s8 + $0xb48] sm:$0xff] }
  0xf4   : > { %1515 = vst [vmem:[%s2091_s20 + $0xa80] sm:$0xff] %v1005_v46  ;;  %1516 = vst [vmem:[%s2091_s20 + $0xa88] sm:$0xff] %v1006_v47  ;;  %v519_v30 = vld [vmem:[%s2068_s8 + $0xb50] sm:$0xff]  ;;  %v1029_v31 = vmul.f32 %v2075_v1, %v517_v28  ;;  %v1030_v32 = vmul.f32 %v2075_v1, %v518_v29  ;;  %v520_v34 = vld [vmem:[%s2068_s8 + $0xb58] sm:$0xff] }
  0xf5   : > { %1517 = vst [vmem:[%s2091_s20 + $0xa90] sm:$0xff] %v1007_v48  ;;  %1518 = vst [vmem:[%s2091_s20 + $0xa98] sm:$0xff] %v1008_v52  ;;  %v1031_v33 = vmul.f32 %v2075_v1, %v519_v30  ;;  %v521_v35 = vld [vmem:[%s2068_s8 + $0xb60] sm:$0xff]  ;;  %v522_v36 = vld [vmem:[%s2068_s8 + $0xb68] sm:$0xff]  ;;  %v1032_v37 = vmul.f32 %v2075_v1, %v520_v34 }
  0xf6   : > { %1519 = vst [vmem:[%s2091_s20 + $0xaa0] sm:$0xff] %v1009_v53  ;;  %1520 = vst [vmem:[%s2091_s20 + $0xaa8] sm:$0xff] %v1010_v54  ;;  %v1033_v38 = vmul.f32 %v2075_v1, %v521_v35  ;;  %v1034_v39 = vmul.f32 %v2075_v1, %v522_v36  ;;  %v523_v40 = vld [vmem:[%s2068_s8 + $0xb70] sm:$0xff]  ;;  %v524_v41 = vld [vmem:[%s2068_s8 + $0xb78] sm:$0xff] }
  0xf7   : > { %1521 = vst [vmem:[%s2091_s20 + $0xab0] sm:$0xff] %v1011_v58  ;;  %1522 = vst [vmem:[%s2091_s20 + $0xab8] sm:$0xff] %v1012_v59  ;;  %v525_v42 = vld [vmem:[%s2068_s8 + $0xb80] sm:$0xff]  ;;  %v1035_v43 = vmul.f32 %v2075_v1, %v523_v40  ;;  %v1036_v44 = vmul.f32 %v2075_v1, %v524_v41  ;;  %v526_v46 = vld [vmem:[%s2068_s8 + $0xb88] sm:$0xff] }
  0xf8   : > { %1523 = vst [vmem:[%s2091_s20 + $0xac0] sm:$0xff] %v1013_v60  ;;  %1524 = vst [vmem:[%s2091_s20 + $0xac8] sm:$0xff] %v1014_v0  ;;  %v1037_v45 = vmul.f32 %v2075_v1, %v525_v42  ;;  %v527_v47 = vld [vmem:[%s2068_s8 + $0xb90] sm:$0xff]  ;;  %v528_v48 = vld [vmem:[%s2068_s8 + $0xb98] sm:$0xff]  ;;  %v1038_v49 = vmul.f32 %v2075_v1, %v526_v46 }
  0xf9   : > { %1525 = vst [vmem:[%s2091_s20 + $0xad0] sm:$0xff] %v1015_v2  ;;  %1526 = vst [vmem:[%s2091_s20 + $0xad8] sm:$0xff] %v1016_v3  ;;  %v1039_v50 = vmul.f32 %v2075_v1, %v527_v47  ;;  %v1040_v51 = vmul.f32 %v2075_v1, %v528_v48  ;;  %v529_v52 = vld [vmem:[%s2068_s8 + $0xba0] sm:$0xff]  ;;  %v530_v53 = vld [vmem:[%s2068_s8 + $0xba8] sm:$0xff] }
  0xfa   : > { %1527 = vst [vmem:[%s2091_s20 + $0xae0] sm:$0xff] %v1017_v7  ;;  %1528 = vst [vmem:[%s2091_s20 + $0xae8] sm:$0xff] %v1018_v8  ;;  %v531_v54 = vld [vmem:[%s2068_s8 + $0xbb0] sm:$0xff]  ;;  %v1041_v55 = vmul.f32 %v2075_v1, %v529_v52  ;;  %v1042_v56 = vmul.f32 %v2075_v1, %v530_v53  ;;  %v532_v58 = vld [vmem:[%s2068_s8 + $0xbb8] sm:$0xff] }
  0xfb   : > { %1529 = vst [vmem:[%s2091_s20 + $0xaf0] sm:$0xff] %v1019_v9  ;;  %1530 = vst [vmem:[%s2091_s20 + $0xaf8] sm:$0xff] %v1020_v13  ;;  %v1043_v57 = vmul.f32 %v2075_v1, %v531_v54  ;;  %v533_v59 = vld [vmem:[%s2068_s8 + $0xbc0] sm:$0xff]  ;;  %v534_v60 = vld [vmem:[%s2068_s8 + $0xbc8] sm:$0xff]  ;;  %v1044_v61 = vmul.f32 %v2075_v1, %v532_v58 }
  0xfc   : > { %1531 = vst [vmem:[%s2091_s20 + $0xb00] sm:$0xff] %v1021_v14  ;;  %1532 = vst [vmem:[%s2091_s20 + $0xb08] sm:$0xff] %v1022_v15  ;;  %v1045_v62 = vmul.f32 %v2075_v1, %v533_v59  ;;  %v1046_v63 = vmul.f32 %v2075_v1, %v534_v60  ;;  %v535_v0 = vld [vmem:[%s2068_s8 + $0xbd0] sm:$0xff]  ;;  %v536_v2 = vld [vmem:[%s2068_s8 + $0xbd8] sm:$0xff] }
  0xfd   : > { %1533 = vst [vmem:[%s2091_s20 + $0xb10] sm:$0xff] %v1023_v19  ;;  %1534 = vst [vmem:[%s2091_s20 + $0xb18] sm:$0xff] %v1024_v20  ;;  %v537_v3 = vld [vmem:[%s2068_s8 + $0xbe0] sm:$0xff]  ;;  %v1047_v4 = vmul.f32 %v2075_v1, %v535_v0  ;;  %v1048_v5 = vmul.f32 %v2075_v1, %v536_v2  ;;  %v538_v7 = vld [vmem:[%s2068_s8 + $0xbe8] sm:$0xff] }
  0xfe   : > { %1535 = vst [vmem:[%s2091_s20 + $0xb20] sm:$0xff] %v1025_v21  ;;  %1536 = vst [vmem:[%s2091_s20 + $0xb28] sm:$0xff] %v1026_v25  ;;  %v1049_v6 = vmul.f32 %v2075_v1, %v537_v3  ;;  %v539_v8 = vld [vmem:[%s2068_s8 + $0xbf0] sm:$0xff]  ;;  %v540_v9 = vld [vmem:[%s2068_s8 + $0xbf8] sm:$0xff]  ;;  %v1050_v10 = vmul.f32 %v2075_v1, %v538_v7 }
  0xff   : > { %1537 = vst [vmem:[%s2091_s20 + $0xb30] sm:$0xff] %v1027_v26  ;;  %1538 = vst [vmem:[%s2091_s20 + $0xb38] sm:$0xff] %v1028_v27  ;;  %v1051_v11 = vmul.f32 %v2075_v1, %v539_v8  ;;  %v1052_v12 = vmul.f32 %v2075_v1, %v540_v9  ;;  %v541_v13 = vld [vmem:[%s2068_s8 + $0xc00] sm:$0xff]  ;;  %v542_v14 = vld [vmem:[%s2068_s8 + $0xc08] sm:$0xff] }
 0x100   : > { %1539 = vst [vmem:[%s2091_s20 + $0xb40] sm:$0xff] %v1029_v31  ;;  %1540 = vst [vmem:[%s2091_s20 + $0xb48] sm:$0xff] %v1030_v32  ;;  %v543_v15 = vld [vmem:[%s2068_s8 + $0xc10] sm:$0xff]  ;;  %v1053_v16 = vmul.f32 %v2075_v1, %v541_v13  ;;  %v1054_v17 = vmul.f32 %v2075_v1, %v542_v14  ;;  %v544_v19 = vld [vmem:[%s2068_s8 + $0xc18] sm:$0xff] }
 0x101   : > { %1541 = vst [vmem:[%s2091_s20 + $0xb50] sm:$0xff] %v1031_v33  ;;  %1542 = vst [vmem:[%s2091_s20 + $0xb58] sm:$0xff] %v1032_v37  ;;  %v1055_v18 = vmul.f32 %v2075_v1, %v543_v15  ;;  %v545_v20 = vld [vmem:[%s2068_s8 + $0xc20] sm:$0xff]  ;;  %v546_v21 = vld [vmem:[%s2068_s8 + $0xc28] sm:$0xff]  ;;  %v1056_v22 = vmul.f32 %v2075_v1, %v544_v19 }
 0x102   : > { %1543 = vst [vmem:[%s2091_s20 + $0xb60] sm:$0xff] %v1033_v38  ;;  %1544 = vst [vmem:[%s2091_s20 + $0xb68] sm:$0xff] %v1034_v39  ;;  %v1057_v23 = vmul.f32 %v2075_v1, %v545_v20  ;;  %v1058_v24 = vmul.f32 %v2075_v1, %v546_v21  ;;  %v547_v25 = vld [vmem:[%s2068_s8 + $0xc30] sm:$0xff]  ;;  %v548_v26 = vld [vmem:[%s2068_s8 + $0xc38] sm:$0xff] }
 0x103   : > { %1545 = vst [vmem:[%s2091_s20 + $0xb70] sm:$0xff] %v1035_v43  ;;  %1546 = vst [vmem:[%s2091_s20 + $0xb78] sm:$0xff] %v1036_v44  ;;  %v549_v27 = vld [vmem:[%s2068_s8 + $0xc40] sm:$0xff]  ;;  %v1059_v28 = vmul.f32 %v2075_v1, %v547_v25  ;;  %v1060_v29 = vmul.f32 %v2075_v1, %v548_v26  ;;  %v550_v31 = vld [vmem:[%s2068_s8 + $0xc48] sm:$0xff] }
 0x104   : > { %1547 = vst [vmem:[%s2091_s20 + $0xb80] sm:$0xff] %v1037_v45  ;;  %1548 = vst [vmem:[%s2091_s20 + $0xb88] sm:$0xff] %v1038_v49  ;;  %v1061_v30 = vmul.f32 %v2075_v1, %v549_v27  ;;  %v551_v32 = vld [vmem:[%s2068_s8 + $0xc50] sm:$0xff]  ;;  %v552_v33 = vld [vmem:[%s2068_s8 + $0xc58] sm:$0xff]  ;;  %v1062_v34 = vmul.f32 %v2075_v1, %v550_v31 }
 0x105   : > { %1549 = vst [vmem:[%s2091_s20 + $0xb90] sm:$0xff] %v1039_v50  ;;  %1550 = vst [vmem:[%s2091_s20 + $0xb98] sm:$0xff] %v1040_v51  ;;  %v1063_v35 = vmul.f32 %v2075_v1, %v551_v32  ;;  %v1064_v36 = vmul.f32 %v2075_v1, %v552_v33  ;;  %v553_v37 = vld [vmem:[%s2068_s8 + $0xc60] sm:$0xff]  ;;  %v554_v38 = vld [vmem:[%s2068_s8 + $0xc68] sm:$0xff] }
 0x106   : > { %1551 = vst [vmem:[%s2091_s20 + $0xba0] sm:$0xff] %v1041_v55  ;;  %1552 = vst [vmem:[%s2091_s20 + $0xba8] sm:$0xff] %v1042_v56  ;;  %v555_v39 = vld [vmem:[%s2068_s8 + $0xc70] sm:$0xff]  ;;  %v1065_v40 = vmul.f32 %v2075_v1, %v553_v37  ;;  %v1066_v41 = vmul.f32 %v2075_v1, %v554_v38  ;;  %v556_v43 = vld [vmem:[%s2068_s8 + $0xc78] sm:$0xff] }
 0x107   : > { %1553 = vst [vmem:[%s2091_s20 + $0xbb0] sm:$0xff] %v1043_v57  ;;  %1554 = vst [vmem:[%s2091_s20 + $0xbb8] sm:$0xff] %v1044_v61  ;;  %v1067_v42 = vmul.f32 %v2075_v1, %v555_v39  ;;  %v557_v44 = vld [vmem:[%s2068_s8 + $0xc80] sm:$0xff]  ;;  %v558_v45 = vld [vmem:[%s2068_s8 + $0xc88] sm:$0xff]  ;;  %v1068_v46 = vmul.f32 %v2075_v1, %v556_v43 }
 0x108   : > { %1555 = vst [vmem:[%s2091_s20 + $0xbc0] sm:$0xff] %v1045_v62  ;;  %1556 = vst [vmem:[%s2091_s20 + $0xbc8] sm:$0xff] %v1046_v63  ;;  %v1069_v47 = vmul.f32 %v2075_v1, %v557_v44  ;;  %v1070_v48 = vmul.f32 %v2075_v1, %v558_v45  ;;  %v559_v49 = vld [vmem:[%s2068_s8 + $0xc90] sm:$0xff]  ;;  %v560_v50 = vld [vmem:[%s2068_s8 + $0xc98] sm:$0xff] }
 0x109   : > { %1557 = vst [vmem:[%s2091_s20 + $0xbd0] sm:$0xff] %v1047_v4  ;;  %1558 = vst [vmem:[%s2091_s20 + $0xbd8] sm:$0xff] %v1048_v5  ;;  %v561_v51 = vld [vmem:[%s2068_s8 + $0xca0] sm:$0xff]  ;;  %v1071_v52 = vmul.f32 %v2075_v1, %v559_v49  ;;  %v1072_v53 = vmul.f32 %v2075_v1, %v560_v50  ;;  %v562_v55 = vld [vmem:[%s2068_s8 + $0xca8] sm:$0xff] }
 0x10a   : > { %1559 = vst [vmem:[%s2091_s20 + $0xbe0] sm:$0xff] %v1049_v6  ;;  %1560 = vst [vmem:[%s2091_s20 + $0xbe8] sm:$0xff] %v1050_v10  ;;  %v1073_v54 = vmul.f32 %v2075_v1, %v561_v51  ;;  %v563_v56 = vld [vmem:[%s2068_s8 + $0xcb0] sm:$0xff]  ;;  %v564_v57 = vld [vmem:[%s2068_s8 + $0xcb8] sm:$0xff]  ;;  %v1074_v58 = vmul.f32 %v2075_v1, %v562_v55 }
 0x10b   : > { %1561 = vst [vmem:[%s2091_s20 + $0xbf0] sm:$0xff] %v1051_v11  ;;  %1562 = vst [vmem:[%s2091_s20 + $0xbf8] sm:$0xff] %v1052_v12  ;;  %v1075_v59 = vmul.f32 %v2075_v1, %v563_v56  ;;  %v1076_v60 = vmul.f32 %v2075_v1, %v564_v57  ;;  %v565_v61 = vld [vmem:[%s2068_s8 + $0xcc0] sm:$0xff]  ;;  %v566_v62 = vld [vmem:[%s2068_s8 + $0xcc8] sm:$0xff] }
 0x10c   : > { %1563 = vst [vmem:[%s2091_s20 + $0xc00] sm:$0xff] %v1053_v16  ;;  %1564 = vst [vmem:[%s2091_s20 + $0xc08] sm:$0xff] %v1054_v17  ;;  %v567_v63 = vld [vmem:[%s2068_s8 + $0xcd0] sm:$0xff]  ;;  %v1077_v0 = vmul.f32 %v2075_v1, %v565_v61  ;;  %v1078_v2 = vmul.f32 %v2075_v1, %v566_v62  ;;  %v568_v4 = vld [vmem:[%s2068_s8 + $0xcd8] sm:$0xff] }
 0x10d   : > { %1565 = vst [vmem:[%s2091_s20 + $0xc10] sm:$0xff] %v1055_v18  ;;  %1566 = vst [vmem:[%s2091_s20 + $0xc18] sm:$0xff] %v1056_v22  ;;  %v1079_v3 = vmul.f32 %v2075_v1, %v567_v63  ;;  %v569_v5 = vld [vmem:[%s2068_s8 + $0xce0] sm:$0xff]  ;;  %v570_v6 = vld [vmem:[%s2068_s8 + $0xce8] sm:$0xff]  ;;  %v1080_v7 = vmul.f32 %v2075_v1, %v568_v4 }
 0x10e   : > { %1567 = vst [vmem:[%s2091_s20 + $0xc20] sm:$0xff] %v1057_v23  ;;  %1568 = vst [vmem:[%s2091_s20 + $0xc28] sm:$0xff] %v1058_v24  ;;  %v1081_v8 = vmul.f32 %v2075_v1, %v569_v5  ;;  %v1082_v9 = vmul.f32 %v2075_v1, %v570_v6  ;;  %v571_v10 = vld [vmem:[%s2068_s8 + $0xcf0] sm:$0xff]  ;;  %v572_v11 = vld [vmem:[%s2068_s8 + $0xcf8] sm:$0xff] }
 0x10f   : > { %1569 = vst [vmem:[%s2091_s20 + $0xc30] sm:$0xff] %v1059_v28  ;;  %1570 = vst [vmem:[%s2091_s20 + $0xc38] sm:$0xff] %v1060_v29  ;;  %v573_v12 = vld [vmem:[%s2068_s8 + $0xd00] sm:$0xff]  ;;  %v1083_v13 = vmul.f32 %v2075_v1, %v571_v10  ;;  %v1084_v14 = vmul.f32 %v2075_v1, %v572_v11  ;;  %v574_v16 = vld [vmem:[%s2068_s8 + $0xd08] sm:$0xff] }
 0x110   : > { %1571 = vst [vmem:[%s2091_s20 + $0xc40] sm:$0xff] %v1061_v30  ;;  %1572 = vst [vmem:[%s2091_s20 + $0xc48] sm:$0xff] %v1062_v34  ;;  %v1085_v15 = vmul.f32 %v2075_v1, %v573_v12  ;;  %v575_v17 = vld [vmem:[%s2068_s8 + $0xd10] sm:$0xff]  ;;  %v576_v18 = vld [vmem:[%s2068_s8 + $0xd18] sm:$0xff]  ;;  %v1086_v19 = vmul.f32 %v2075_v1, %v574_v16 }
 0x111   : > { %1573 = vst [vmem:[%s2091_s20 + $0xc50] sm:$0xff] %v1063_v35  ;;  %1574 = vst [vmem:[%s2091_s20 + $0xc58] sm:$0xff] %v1064_v36  ;;  %v1087_v20 = vmul.f32 %v2075_v1, %v575_v17  ;;  %v1088_v21 = vmul.f32 %v2075_v1, %v576_v18  ;;  %v577_v22 = vld [vmem:[%s2068_s8 + $0xd20] sm:$0xff]  ;;  %v578_v23 = vld [vmem:[%s2068_s8 + $0xd28] sm:$0xff] }
 0x112   : > { %1575 = vst [vmem:[%s2091_s20 + $0xc60] sm:$0xff] %v1065_v40  ;;  %1576 = vst [vmem:[%s2091_s20 + $0xc68] sm:$0xff] %v1066_v41  ;;  %v579_v24 = vld [vmem:[%s2068_s8 + $0xd30] sm:$0xff]  ;;  %v1089_v25 = vmul.f32 %v2075_v1, %v577_v22  ;;  %v1090_v26 = vmul.f32 %v2075_v1, %v578_v23  ;;  %v580_v28 = vld [vmem:[%s2068_s8 + $0xd38] sm:$0xff] }
 0x113   : > { %1577 = vst [vmem:[%s2091_s20 + $0xc70] sm:$0xff] %v1067_v42  ;;  %1578 = vst [vmem:[%s2091_s20 + $0xc78] sm:$0xff] %v1068_v46  ;;  %v1091_v27 = vmul.f32 %v2075_v1, %v579_v24  ;;  %v581_v29 = vld [vmem:[%s2068_s8 + $0xd40] sm:$0xff]  ;;  %v582_v30 = vld [vmem:[%s2068_s8 + $0xd48] sm:$0xff]  ;;  %v1092_v31 = vmul.f32 %v2075_v1, %v580_v28 }
 0x114   : > { %1579 = vst [vmem:[%s2091_s20 + $0xc80] sm:$0xff] %v1069_v47  ;;  %1580 = vst [vmem:[%s2091_s20 + $0xc88] sm:$0xff] %v1070_v48  ;;  %v1093_v32 = vmul.f32 %v2075_v1, %v581_v29  ;;  %v1094_v33 = vmul.f32 %v2075_v1, %v582_v30  ;;  %v583_v34 = vld [vmem:[%s2068_s8 + $0xd50] sm:$0xff]  ;;  %v584_v35 = vld [vmem:[%s2068_s8 + $0xd58] sm:$0xff] }
 0x115   : > { %1581 = vst [vmem:[%s2091_s20 + $0xc90] sm:$0xff] %v1071_v52  ;;  %1582 = vst [vmem:[%s2091_s20 + $0xc98] sm:$0xff] %v1072_v53  ;;  %v585_v36 = vld [vmem:[%s2068_s8 + $0xd60] sm:$0xff]  ;;  %v1095_v37 = vmul.f32 %v2075_v1, %v583_v34  ;;  %v1096_v38 = vmul.f32 %v2075_v1, %v584_v35  ;;  %v586_v40 = vld [vmem:[%s2068_s8 + $0xd68] sm:$0xff] }
 0x116   : > { %1583 = vst [vmem:[%s2091_s20 + $0xca0] sm:$0xff] %v1073_v54  ;;  %1584 = vst [vmem:[%s2091_s20 + $0xca8] sm:$0xff] %v1074_v58  ;;  %v1097_v39 = vmul.f32 %v2075_v1, %v585_v36  ;;  %v587_v41 = vld [vmem:[%s2068_s8 + $0xd70] sm:$0xff]  ;;  %v588_v42 = vld [vmem:[%s2068_s8 + $0xd78] sm:$0xff]  ;;  %v1098_v43 = vmul.f32 %v2075_v1, %v586_v40 }
 0x117   : > { %1585 = vst [vmem:[%s2091_s20 + $0xcb0] sm:$0xff] %v1075_v59  ;;  %1586 = vst [vmem:[%s2091_s20 + $0xcb8] sm:$0xff] %v1076_v60  ;;  %v1099_v44 = vmul.f32 %v2075_v1, %v587_v41  ;;  %v1100_v45 = vmul.f32 %v2075_v1, %v588_v42  ;;  %v589_v46 = vld [vmem:[%s2068_s8 + $0xd80] sm:$0xff]  ;;  %v590_v47 = vld [vmem:[%s2068_s8 + $0xd88] sm:$0xff] }
 0x118   : > { %1587 = vst [vmem:[%s2091_s20 + $0xcc0] sm:$0xff] %v1077_v0  ;;  %1588 = vst [vmem:[%s2091_s20 + $0xcc8] sm:$0xff] %v1078_v2  ;;  %v591_v48 = vld [vmem:[%s2068_s8 + $0xd90] sm:$0xff]  ;;  %v1101_v49 = vmul.f32 %v2075_v1, %v589_v46  ;;  %v1102_v50 = vmul.f32 %v2075_v1, %v590_v47  ;;  %v592_v52 = vld [vmem:[%s2068_s8 + $0xd98] sm:$0xff] }
 0x119   : > { %1589 = vst [vmem:[%s2091_s20 + $0xcd0] sm:$0xff] %v1079_v3  ;;  %1590 = vst [vmem:[%s2091_s20 + $0xcd8] sm:$0xff] %v1080_v7  ;;  %v1103_v51 = vmul.f32 %v2075_v1, %v591_v48  ;;  %v593_v53 = vld [vmem:[%s2068_s8 + $0xda0] sm:$0xff]  ;;  %v594_v54 = vld [vmem:[%s2068_s8 + $0xda8] sm:$0xff]  ;;  %v1104_v55 = vmul.f32 %v2075_v1, %v592_v52 }
 0x11a   : > { %1591 = vst [vmem:[%s2091_s20 + $0xce0] sm:$0xff] %v1081_v8  ;;  %1592 = vst [vmem:[%s2091_s20 + $0xce8] sm:$0xff] %v1082_v9  ;;  %v1105_v56 = vmul.f32 %v2075_v1, %v593_v53  ;;  %v1106_v57 = vmul.f32 %v2075_v1, %v594_v54  ;;  %v595_v58 = vld [vmem:[%s2068_s8 + $0xdb0] sm:$0xff]  ;;  %v596_v59 = vld [vmem:[%s2068_s8 + $0xdb8] sm:$0xff] }
 0x11b   : > { %1593 = vst [vmem:[%s2091_s20 + $0xcf0] sm:$0xff] %v1083_v13  ;;  %1594 = vst [vmem:[%s2091_s20 + $0xcf8] sm:$0xff] %v1084_v14  ;;  %v597_v60 = vld [vmem:[%s2068_s8 + $0xdc0] sm:$0xff]  ;;  %v1107_v61 = vmul.f32 %v2075_v1, %v595_v58  ;;  %v1108_v62 = vmul.f32 %v2075_v1, %v596_v59  ;;  %v598_v0 = vld [vmem:[%s2068_s8 + $0xdc8] sm:$0xff] }
 0x11c   : > { %1595 = vst [vmem:[%s2091_s20 + $0xd00] sm:$0xff] %v1085_v15  ;;  %1596 = vst [vmem:[%s2091_s20 + $0xd08] sm:$0xff] %v1086_v19  ;;  %v1109_v63 = vmul.f32 %v2075_v1, %v597_v60  ;;  %v599_v2 = vld [vmem:[%s2068_s8 + $0xdd0] sm:$0xff]  ;;  %v600_v3 = vld [vmem:[%s2068_s8 + $0xdd8] sm:$0xff]  ;;  %v1110_v4 = vmul.f32 %v2075_v1, %v598_v0 }
 0x11d   : > { %1597 = vst [vmem:[%s2091_s20 + $0xd10] sm:$0xff] %v1087_v20  ;;  %1598 = vst [vmem:[%s2091_s20 + $0xd18] sm:$0xff] %v1088_v21  ;;  %v1111_v5 = vmul.f32 %v2075_v1, %v599_v2  ;;  %v1112_v6 = vmul.f32 %v2075_v1, %v600_v3  ;;  %v601_v7 = vld [vmem:[%s2068_s8 + $0xde0] sm:$0xff]  ;;  %v602_v8 = vld [vmem:[%s2068_s8 + $0xde8] sm:$0xff] }
 0x11e   : > { %1599 = vst [vmem:[%s2091_s20 + $0xd20] sm:$0xff] %v1089_v25  ;;  %1600 = vst [vmem:[%s2091_s20 + $0xd28] sm:$0xff] %v1090_v26  ;;  %v603_v9 = vld [vmem:[%s2068_s8 + $0xdf0] sm:$0xff]  ;;  %v1113_v10 = vmul.f32 %v2075_v1, %v601_v7  ;;  %v1114_v11 = vmul.f32 %v2075_v1, %v602_v8  ;;  %v604_v13 = vld [vmem:[%s2068_s8 + $0xdf8] sm:$0xff] }
 0x11f   : > { %1601 = vst [vmem:[%s2091_s20 + $0xd30] sm:$0xff] %v1091_v27  ;;  %1602 = vst [vmem:[%s2091_s20 + $0xd38] sm:$0xff] %v1092_v31  ;;  %v1115_v12 = vmul.f32 %v2075_v1, %v603_v9  ;;  %v605_v14 = vld [vmem:[%s2068_s8 + $0xe00] sm:$0xff]  ;;  %v606_v15 = vld [vmem:[%s2068_s8 + $0xe08] sm:$0xff]  ;;  %v1116_v16 = vmul.f32 %v2075_v1, %v604_v13 }
 0x120   : > { %1603 = vst [vmem:[%s2091_s20 + $0xd40] sm:$0xff] %v1093_v32  ;;  %1604 = vst [vmem:[%s2091_s20 + $0xd48] sm:$0xff] %v1094_v33  ;;  %v1117_v17 = vmul.f32 %v2075_v1, %v605_v14  ;;  %v1118_v18 = vmul.f32 %v2075_v1, %v606_v15  ;;  %v607_v19 = vld [vmem:[%s2068_s8 + $0xe10] sm:$0xff]  ;;  %v608_v20 = vld [vmem:[%s2068_s8 + $0xe18] sm:$0xff] }
 0x121   : > { %1605 = vst [vmem:[%s2091_s20 + $0xd50] sm:$0xff] %v1095_v37  ;;  %1606 = vst [vmem:[%s2091_s20 + $0xd58] sm:$0xff] %v1096_v38  ;;  %v609_v21 = vld [vmem:[%s2068_s8 + $0xe20] sm:$0xff]  ;;  %v1119_v22 = vmul.f32 %v2075_v1, %v607_v19  ;;  %v1120_v23 = vmul.f32 %v2075_v1, %v608_v20  ;;  %v610_v25 = vld [vmem:[%s2068_s8 + $0xe28] sm:$0xff] }
 0x122   : > { %1607 = vst [vmem:[%s2091_s20 + $0xd60] sm:$0xff] %v1097_v39  ;;  %1608 = vst [vmem:[%s2091_s20 + $0xd68] sm:$0xff] %v1098_v43  ;;  %v1121_v24 = vmul.f32 %v2075_v1, %v609_v21  ;;  %v611_v26 = vld [vmem:[%s2068_s8 + $0xe30] sm:$0xff]  ;;  %v612_v27 = vld [vmem:[%s2068_s8 + $0xe38] sm:$0xff]  ;;  %v1122_v28 = vmul.f32 %v2075_v1, %v610_v25 }
 0x123   : > { %1609 = vst [vmem:[%s2091_s20 + $0xd70] sm:$0xff] %v1099_v44  ;;  %1610 = vst [vmem:[%s2091_s20 + $0xd78] sm:$0xff] %v1100_v45  ;;  %v1123_v29 = vmul.f32 %v2075_v1, %v611_v26  ;;  %v1124_v30 = vmul.f32 %v2075_v1, %v612_v27  ;;  %v613_v31 = vld [vmem:[%s2068_s8 + $0xe40] sm:$0xff]  ;;  %v614_v32 = vld [vmem:[%s2068_s8 + $0xe48] sm:$0xff] }
 0x124   : > { %1611 = vst [vmem:[%s2091_s20 + $0xd80] sm:$0xff] %v1101_v49  ;;  %1612 = vst [vmem:[%s2091_s20 + $0xd88] sm:$0xff] %v1102_v50  ;;  %v615_v33 = vld [vmem:[%s2068_s8 + $0xe50] sm:$0xff]  ;;  %v1125_v34 = vmul.f32 %v2075_v1, %v613_v31  ;;  %v1126_v35 = vmul.f32 %v2075_v1, %v614_v32  ;;  %v616_v37 = vld [vmem:[%s2068_s8 + $0xe58] sm:$0xff] }
 0x125   : > { %1613 = vst [vmem:[%s2091_s20 + $0xd90] sm:$0xff] %v1103_v51  ;;  %1614 = vst [vmem:[%s2091_s20 + $0xd98] sm:$0xff] %v1104_v55  ;;  %v1127_v36 = vmul.f32 %v2075_v1, %v615_v33  ;;  %v617_v38 = vld [vmem:[%s2068_s8 + $0xe60] sm:$0xff]  ;;  %v618_v39 = vld [vmem:[%s2068_s8 + $0xe68] sm:$0xff]  ;;  %v1128_v40 = vmul.f32 %v2075_v1, %v616_v37 }
 0x126   : > { %1615 = vst [vmem:[%s2091_s20 + $0xda0] sm:$0xff] %v1105_v56  ;;  %1616 = vst [vmem:[%s2091_s20 + $0xda8] sm:$0xff] %v1106_v57  ;;  %v1129_v41 = vmul.f32 %v2075_v1, %v617_v38  ;;  %v1130_v42 = vmul.f32 %v2075_v1, %v618_v39  ;;  %v619_v43 = vld [vmem:[%s2068_s8 + $0xe70] sm:$0xff]  ;;  %v620_v44 = vld [vmem:[%s2068_s8 + $0xe78] sm:$0xff] }
 0x127   : > { %1617 = vst [vmem:[%s2091_s20 + $0xdb0] sm:$0xff] %v1107_v61  ;;  %1618 = vst [vmem:[%s2091_s20 + $0xdb8] sm:$0xff] %v1108_v62  ;;  %v621_v45 = vld [vmem:[%s2068_s8 + $0xe80] sm:$0xff]  ;;  %v1131_v46 = vmul.f32 %v2075_v1, %v619_v43  ;;  %v1132_v47 = vmul.f32 %v2075_v1, %v620_v44  ;;  %v622_v49 = vld [vmem:[%s2068_s8 + $0xe88] sm:$0xff] }
 0x128   : > { %1619 = vst [vmem:[%s2091_s20 + $0xdc0] sm:$0xff] %v1109_v63  ;;  %1620 = vst [vmem:[%s2091_s20 + $0xdc8] sm:$0xff] %v1110_v4  ;;  %v1133_v48 = vmul.f32 %v2075_v1, %v621_v45  ;;  %v623_v50 = vld [vmem:[%s2068_s8 + $0xe90] sm:$0xff]  ;;  %v624_v51 = vld [vmem:[%s2068_s8 + $0xe98] sm:$0xff]  ;;  %v1134_v52 = vmul.f32 %v2075_v1, %v622_v49 }
 0x129   : > { %1621 = vst [vmem:[%s2091_s20 + $0xdd0] sm:$0xff] %v1111_v5  ;;  %1622 = vst [vmem:[%s2091_s20 + $0xdd8] sm:$0xff] %v1112_v6  ;;  %v1135_v53 = vmul.f32 %v2075_v1, %v623_v50  ;;  %v1136_v54 = vmul.f32 %v2075_v1, %v624_v51  ;;  %v625_v55 = vld [vmem:[%s2068_s8 + $0xea0] sm:$0xff]  ;;  %v626_v56 = vld [vmem:[%s2068_s8 + $0xea8] sm:$0xff] }
 0x12a   : > { %1623 = vst [vmem:[%s2091_s20 + $0xde0] sm:$0xff] %v1113_v10  ;;  %1624 = vst [vmem:[%s2091_s20 + $0xde8] sm:$0xff] %v1114_v11  ;;  %v627_v57 = vld [vmem:[%s2068_s8 + $0xeb0] sm:$0xff]  ;;  %v1137_v58 = vmul.f32 %v2075_v1, %v625_v55  ;;  %v1138_v59 = vmul.f32 %v2075_v1, %v626_v56  ;;  %v628_v61 = vld [vmem:[%s2068_s8 + $0xeb8] sm:$0xff] }
 0x12b   : > { %1625 = vst [vmem:[%s2091_s20 + $0xdf0] sm:$0xff] %v1115_v12  ;;  %1626 = vst [vmem:[%s2091_s20 + $0xdf8] sm:$0xff] %v1116_v16  ;;  %v1139_v60 = vmul.f32 %v2075_v1, %v627_v57  ;;  %v629_v62 = vld [vmem:[%s2068_s8 + $0xec0] sm:$0xff]  ;;  %v630_v63 = vld [vmem:[%s2068_s8 + $0xec8] sm:$0xff]  ;;  %v1140_v0 = vmul.f32 %v2075_v1, %v628_v61 }
 0x12c   : > { %1627 = vst [vmem:[%s2091_s20 + $0xe00] sm:$0xff] %v1117_v17  ;;  %1628 = vst [vmem:[%s2091_s20 + $0xe08] sm:$0xff] %v1118_v18  ;;  %v1141_v2 = vmul.f32 %v2075_v1, %v629_v62  ;;  %v1142_v3 = vmul.f32 %v2075_v1, %v630_v63  ;;  %v631_v4 = vld [vmem:[%s2068_s8 + $0xed0] sm:$0xff]  ;;  %v632_v5 = vld [vmem:[%s2068_s8 + $0xed8] sm:$0xff] }
 0x12d   : > { %1629 = vst [vmem:[%s2091_s20 + $0xe10] sm:$0xff] %v1119_v22  ;;  %1630 = vst [vmem:[%s2091_s20 + $0xe18] sm:$0xff] %v1120_v23  ;;  %v633_v6 = vld [vmem:[%s2068_s8 + $0xee0] sm:$0xff]  ;;  %v1143_v7 = vmul.f32 %v2075_v1, %v631_v4  ;;  %v1144_v8 = vmul.f32 %v2075_v1, %v632_v5  ;;  %v634_v10 = vld [vmem:[%s2068_s8 + $0xee8] sm:$0xff] }
 0x12e   : > { %1631 = vst [vmem:[%s2091_s20 + $0xe20] sm:$0xff] %v1121_v24  ;;  %1632 = vst [vmem:[%s2091_s20 + $0xe28] sm:$0xff] %v1122_v28  ;;  %v1145_v9 = vmul.f32 %v2075_v1, %v633_v6  ;;  %v635_v11 = vld [vmem:[%s2068_s8 + $0xef0] sm:$0xff]  ;;  %v636_v12 = vld [vmem:[%s2068_s8 + $0xef8] sm:$0xff]  ;;  %v1146_v13 = vmul.f32 %v2075_v1, %v634_v10 }
 0x12f   : > { %1633 = vst [vmem:[%s2091_s20 + $0xe30] sm:$0xff] %v1123_v29  ;;  %1634 = vst [vmem:[%s2091_s20 + $0xe38] sm:$0xff] %v1124_v30  ;;  %v1147_v14 = vmul.f32 %v2075_v1, %v635_v11  ;;  %v1148_v15 = vmul.f32 %v2075_v1, %v636_v12  ;;  %v637_v16 = vld [vmem:[%s2068_s8 + $0xf00] sm:$0xff]  ;;  %v638_v17 = vld [vmem:[%s2068_s8 + $0xf08] sm:$0xff] }
 0x130   : > { %1635 = vst [vmem:[%s2091_s20 + $0xe40] sm:$0xff] %v1125_v34  ;;  %1636 = vst [vmem:[%s2091_s20 + $0xe48] sm:$0xff] %v1126_v35  ;;  %v639_v18 = vld [vmem:[%s2068_s8 + $0xf10] sm:$0xff]  ;;  %v1149_v19 = vmul.f32 %v2075_v1, %v637_v16  ;;  %v1150_v20 = vmul.f32 %v2075_v1, %v638_v17  ;;  %v640_v22 = vld [vmem:[%s2068_s8 + $0xf18] sm:$0xff] }
 0x131   : > { %1637 = vst [vmem:[%s2091_s20 + $0xe50] sm:$0xff] %v1127_v36  ;;  %1638 = vst [vmem:[%s2091_s20 + $0xe58] sm:$0xff] %v1128_v40  ;;  %v1151_v21 = vmul.f32 %v2075_v1, %v639_v18  ;;  %v641_v23 = vld [vmem:[%s2068_s8 + $0xf20] sm:$0xff]  ;;  %v642_v24 = vld [vmem:[%s2068_s8 + $0xf28] sm:$0xff]  ;;  %v1152_v25 = vmul.f32 %v2075_v1, %v640_v22 }
 0x132   : > { %1639 = vst [vmem:[%s2091_s20 + $0xe60] sm:$0xff] %v1129_v41  ;;  %1640 = vst [vmem:[%s2091_s20 + $0xe68] sm:$0xff] %v1130_v42  ;;  %v1153_v26 = vmul.f32 %v2075_v1, %v641_v23  ;;  %v1154_v27 = vmul.f32 %v2075_v1, %v642_v24  ;;  %v643_v28 = vld [vmem:[%s2068_s8 + $0xf30] sm:$0xff]  ;;  %v644_v29 = vld [vmem:[%s2068_s8 + $0xf38] sm:$0xff] }
 0x133   : > { %1641 = vst [vmem:[%s2091_s20 + $0xe70] sm:$0xff] %v1131_v46  ;;  %1642 = vst [vmem:[%s2091_s20 + $0xe78] sm:$0xff] %v1132_v47  ;;  %v645_v30 = vld [vmem:[%s2068_s8 + $0xf40] sm:$0xff]  ;;  %v1155_v31 = vmul.f32 %v2075_v1, %v643_v28  ;;  %v1156_v32 = vmul.f32 %v2075_v1, %v644_v29  ;;  %v646_v34 = vld [vmem:[%s2068_s8 + $0xf48] sm:$0xff] }
 0x134   : > { %1643 = vst [vmem:[%s2091_s20 + $0xe80] sm:$0xff] %v1133_v48  ;;  %1644 = vst [vmem:[%s2091_s20 + $0xe88] sm:$0xff] %v1134_v52  ;;  %v1157_v33 = vmul.f32 %v2075_v1, %v645_v30  ;;  %v647_v35 = vld [vmem:[%s2068_s8 + $0xf50] sm:$0xff]  ;;  %v648_v36 = vld [vmem:[%s2068_s8 + $0xf58] sm:$0xff]  ;;  %v1158_v37 = vmul.f32 %v2075_v1, %v646_v34 }
 0x135   : > { %1645 = vst [vmem:[%s2091_s20 + $0xe90] sm:$0xff] %v1135_v53  ;;  %1646 = vst [vmem:[%s2091_s20 + $0xe98] sm:$0xff] %v1136_v54  ;;  %v1159_v38 = vmul.f32 %v2075_v1, %v647_v35  ;;  %v1160_v39 = vmul.f32 %v2075_v1, %v648_v36  ;;  %v649_v40 = vld [vmem:[%s2068_s8 + $0xf60] sm:$0xff]  ;;  %v650_v41 = vld [vmem:[%s2068_s8 + $0xf68] sm:$0xff] }
 0x136   : > { %1647 = vst [vmem:[%s2091_s20 + $0xea0] sm:$0xff] %v1137_v58  ;;  %1648 = vst [vmem:[%s2091_s20 + $0xea8] sm:$0xff] %v1138_v59  ;;  %v651_v42 = vld [vmem:[%s2068_s8 + $0xf70] sm:$0xff]  ;;  %v1161_v43 = vmul.f32 %v2075_v1, %v649_v40  ;;  %v1162_v44 = vmul.f32 %v2075_v1, %v650_v41  ;;  %v652_v46 = vld [vmem:[%s2068_s8 + $0xf78] sm:$0xff] }
 0x137   : > { %1649 = vst [vmem:[%s2091_s20 + $0xeb0] sm:$0xff] %v1139_v60  ;;  %1650 = vst [vmem:[%s2091_s20 + $0xeb8] sm:$0xff] %v1140_v0  ;;  %v1163_v45 = vmul.f32 %v2075_v1, %v651_v42  ;;  %v653_v47 = vld [vmem:[%s2068_s8 + $0xf80] sm:$0xff]  ;;  %v654_v48 = vld [vmem:[%s2068_s8 + $0xf88] sm:$0xff]  ;;  %v1164_v49 = vmul.f32 %v2075_v1, %v652_v46 }
 0x138   : > { %1651 = vst [vmem:[%s2091_s20 + $0xec0] sm:$0xff] %v1141_v2  ;;  %1652 = vst [vmem:[%s2091_s20 + $0xec8] sm:$0xff] %v1142_v3  ;;  %v1165_v50 = vmul.f32 %v2075_v1, %v653_v47  ;;  %v1166_v51 = vmul.f32 %v2075_v1, %v654_v48  ;;  %v655_v52 = vld [vmem:[%s2068_s8 + $0xf90] sm:$0xff]  ;;  %v656_v53 = vld [vmem:[%s2068_s8 + $0xf98] sm:$0xff] }
 0x139   : > { %1653 = vst [vmem:[%s2091_s20 + $0xed0] sm:$0xff] %v1143_v7  ;;  %1654 = vst [vmem:[%s2091_s20 + $0xed8] sm:$0xff] %v1144_v8  ;;  %v657_v54 = vld [vmem:[%s2068_s8 + $0xfa0] sm:$0xff]  ;;  %v1167_v55 = vmul.f32 %v2075_v1, %v655_v52  ;;  %v1168_v56 = vmul.f32 %v2075_v1, %v656_v53  ;;  %v658_v58 = vld [vmem:[%s2068_s8 + $0xfa8] sm:$0xff] }
 0x13a   : > { %1655 = vst [vmem:[%s2091_s20 + $0xee0] sm:$0xff] %v1145_v9  ;;  %1656 = vst [vmem:[%s2091_s20 + $0xee8] sm:$0xff] %v1146_v13  ;;  %v1169_v57 = vmul.f32 %v2075_v1, %v657_v54  ;;  %v659_v59 = vld [vmem:[%s2068_s8 + $0xfb0] sm:$0xff]  ;;  %v660_v60 = vld [vmem:[%s2068_s8 + $0xfb8] sm:$0xff]  ;;  %v1170_v61 = vmul.f32 %v2075_v1, %v658_v58 }
 0x13b   : > { %1657 = vst [vmem:[%s2091_s20 + $0xef0] sm:$0xff] %v1147_v14  ;;  %1658 = vst [vmem:[%s2091_s20 + $0xef8] sm:$0xff] %v1148_v15  ;;  %v1171_v62 = vmul.f32 %v2075_v1, %v659_v59  ;;  %v1172_v63 = vmul.f32 %v2075_v1, %v660_v60  ;;  %v661_v0 = vld [vmem:[%s2068_s8 + $0xfc0] sm:$0xff]  ;;  %v662_v2 = vld [vmem:[%s2068_s8 + $0xfc8] sm:$0xff] }
 0x13c   : > { %1659 = vst [vmem:[%s2091_s20 + $0xf00] sm:$0xff] %v1149_v19  ;;  %1660 = vst [vmem:[%s2091_s20 + $0xf08] sm:$0xff] %v1150_v20  ;;  %v663_v3 = vld [vmem:[%s2068_s8 + $0xfd0] sm:$0xff]  ;;  %v1173_v4 = vmul.f32 %v2075_v1, %v661_v0  ;;  %v1174_v5 = vmul.f32 %v2075_v1, %v662_v2  ;;  %v664_v7 = vld [vmem:[%s2068_s8 + $0xfd8] sm:$0xff] }
 0x13d   : > { %1661 = vst [vmem:[%s2091_s20 + $0xf10] sm:$0xff] %v1151_v21  ;;  %1662 = vst [vmem:[%s2091_s20 + $0xf18] sm:$0xff] %v1152_v25  ;;  %v1175_v6 = vmul.f32 %v2075_v1, %v663_v3  ;;  %v665_v8 = vld [vmem:[%s2068_s8 + $0xfe0] sm:$0xff]  ;;  %v666_v9 = vld [vmem:[%s2068_s8 + $0xfe8] sm:$0xff]  ;;  %v1176_v10 = vmul.f32 %v2075_v1, %v664_v7 }
 0x13e   : > { %1663 = vst [vmem:[%s2091_s20 + $0xf20] sm:$0xff] %v1153_v26  ;;  %1664 = vst [vmem:[%s2091_s20 + $0xf28] sm:$0xff] %v1154_v27  ;;  %v1177_v11 = vmul.f32 %v2075_v1, %v665_v8  ;;  %v1178_v12 = vmul.f32 %v2075_v1, %v666_v9 }
 0x13f   : > { %1665 = vst [vmem:[%s2091_s20 + $0xf30] sm:$0xff] %v1155_v31  ;;  %1666 = vst [vmem:[%s2091_s20 + $0xf38] sm:$0xff] %v1156_v32 }
 0x140   : > { %1667 = vst [vmem:[%s2091_s20 + $0xf40] sm:$0xff] %v1157_v33  ;;  %1668 = vst [vmem:[%s2091_s20 + $0xf48] sm:$0xff] %v1158_v37 }
 0x141   : > { %1669 = vst [vmem:[%s2091_s20 + $0xf50] sm:$0xff] %v1159_v38  ;;  %1670 = vst [vmem:[%s2091_s20 + $0xf58] sm:$0xff] %v1160_v39 }
 0x142   : > { %1671 = vst [vmem:[%s2091_s20 + $0xf60] sm:$0xff] %v1161_v43  ;;  %1672 = vst [vmem:[%s2091_s20 + $0xf68] sm:$0xff] %v1162_v44 }
 0x143   : > { %1673 = vst [vmem:[%s2091_s20 + $0xf70] sm:$0xff] %v1163_v45  ;;  %1674 = vst [vmem:[%s2091_s20 + $0xf78] sm:$0xff] %v1164_v49 }
 0x144   : > { %1675 = vst [vmem:[%s2091_s20 + $0xf80] sm:$0xff] %v1165_v50  ;;  %1676 = vst [vmem:[%s2091_s20 + $0xf88] sm:$0xff] %v1166_v51 }
 0x145   : > { %1677 = vst [vmem:[%s2091_s20 + $0xf90] sm:$0xff] %v1167_v55  ;;  %1678 = vst [vmem:[%s2091_s20 + $0xf98] sm:$0xff] %v1168_v56 }
 0x146   : > { %1679 = vst [vmem:[%s2091_s20 + $0xfa0] sm:$0xff] %v1169_v57  ;;  %1680 = vst [vmem:[%s2091_s20 + $0xfa8] sm:$0xff] %v1170_v61  ;;  %1696 = sbr.rel (!%p2009_p9) target bundleno = 359 (0x167), region = 32 }
 0x147   : > { %1681 = vst [vmem:[%s2091_s20 + $0xfb0] sm:$0xff] %v1171_v62  ;;  %1682 = vst [vmem:[%s2091_s20 + $0xfb8] sm:$0xff] %v1172_v63 }
 0x148   : > { %1683 = vst [vmem:[%s2091_s20 + $0xfc0] sm:$0xff] %v1173_v4  ;;  %1684 = vst [vmem:[%s2091_s20 + $0xfc8] sm:$0xff] %v1174_v5 }
 0x149   : > { %1685 = vst [vmem:[%s2091_s20 + $0xfd0] sm:$0xff] %v1175_v6  ;;  %1686 = vst [vmem:[%s2091_s20 + $0xfd8] sm:$0xff] %v1176_v10 }
 0x14a   : > { %1687 = vst [vmem:[%s2091_s20 + $0xfe0] sm:$0xff] %v1177_v11  ;;  %1688 = vst [vmem:[%s2091_s20 + $0xfe8] sm:$0xff] %v1178_v12 }
 0x14b   : > { %s3686_s7 = smov (!%p1699_p6, %s1698_s7), 102 }
 0x14c   : > { %s3612_s9 = smul.u32 640, %s3686_s7 }
 0x14e   : > { %s1704_s10 = ssub.s32 65280, %s3612_s9 }
 0x14f   : > { %1705 = vsyncadd %s1690_s29, %s1704_s10  ;;  %p1795_p10 = scmp.ne.s32.totalorder %s3612_s9, 0  ;;  %s1811_s21 = smul.u32 65280, %s1986_s0 }
 0x150   : > { %s1711_s15 = sshll.u32 %s2091_s20, 4  ;;  %s1944_s25 = smov [#allocation7]   ;;  %s3625_s15 = int_to_ptr.vmem [resolvable:$true] %s1711_s15 }
 0x151   : > { %s3623_s23 = scalar_lea.hbm %s3672_s2, %s1811_s21  ;;  %s1875_s24 = scalar_lea.vmem %s3625_s15, %s3612_s9 }
 0x152   : > { %p1876_p9 = scmp.ne.s32.totalorder %s3625_s15, %s1875_s24  ;;  %s1879_s26 = sshll.u32 %s1944_s25, 4  ;;  %s1880_s26 = int_to_ptr.vmem [resolvable:$false] %s1879_s26 }
 0x153   : > { %s1881_s0 = scalar_lea.vmem %s1880_s26, 130560  ;;  %p1882_p7 = scmp.lt.s32.totalorder %s3625_s15, %s1880_s26 }
 0x154   : > { %p1877_p11 = pnand %p1876_p9, %p1795_p10  ;;  %p1883_p8 = scmp.lt.s32.totalorder %s1881_s0, %s1875_s24 }
 0x156   : > { %p1878_p13 = pneg %p1877_p11  ;;  %p1884_p12 = por %p1883_p8, %p1882_p7 }
 0x158   : > { %p1885_p0 = pnand %p1884_p12, %p1878_p13 }
 0x15a   : > { %1888 = shalt.err (!%p1885_p0)
}
 0x15b   : > { %s1889_s28 = scalar_lea.hbm %s3623_s23, %s3612_s9  ;;  %s1893_s6 = scalar_lea.hbm %s3672_s2, 122880 }
 0x15c   : > { %p1890_p1 = scmp.ne.s32.totalorder %s3623_s23, %s1889_s28  ;;  %p1894_p4 = scmp.lt.s32.totalorder %s3623_s23, %s3672_s2 }
 0x15d   : > { %p1895_p5 = scmp.lt.s32.totalorder %s1893_s6, %s1889_s28 }
 0x15e   : > { %p1891_p3 = pnand %p1890_p1, %p1795_p10 }
 0x15f   : > { %p1896_p6 = por %p1895_p5, %p1894_p4 }
 0x160   : > { %p1892_p2 = pneg %p1891_p3 }
 0x162   : > { %p1897_p9 = pnand %p1896_p6, %p1892_p2 }
 0x164   : > { %1900 = shalt.err (!%p1897_p9)
}
 0x165   : > { %s1945_s20 = smov 640   ;;  %s1946_s4 = smov 40  }
 0x166   : > { %1717 = dma.vmem_to_hbm [thread:$0]  (%p1795_p10), %s3625_s15, %s3612_s9, %s3623_s23, %s1690_s29, %s1945_s20, %s1945_s20, %s1946_s4  }
 0x167 PF: > { %s1726_s7 = sand.u32 1, %s1927_s11   ;;  %p3677_p11 = scmp.ne.s32.totalorder %s3676_s22, 0 }
 0x168   : > { %p3678_p13 = scmp.ge.s32.totalorder %s1939_s14, 2  ;;  %s1727_s10 = scalar_lea.sflag [#allocation6], %s1726_s7 }
 0x16a   : > { %p1807_p7 = pnand %p3678_p13, %p3677_p11 }
 0x16c   : > { %p1808_p8 = pneg %p1807_p7 }
 0x16e   : > { %1922 = dma.done.wait (%p1808_p8), %s1727_s10, 65280  }
 0x16f   : > { %1924 = vsyncadd (%p1808_p8), %s1727_s10, 4294902016  ;;  %p16_p12 = scmp.ge.s32.totalorder %s1990_s16, 4   ;;  %s3679_s11 = smov %s1931_s12 }
 0x170   : > { %s3680_s12 = smov %s1935_s13  ;;  %s3681_s13 = smov %s2002_s19 }
 0x171   : > { %s3682_s14 = smov %s1990_s16  ;;  %18 = sbr.rel (!%p16_p12) target bundleno = 7 (0x7), region = 69 }
 0x176   :  { %1732 = vsyncpa [#allocation5], 1 }
 0x177   :  { %1734 = vsyncpa [#allocation5 + $0x1], 1 }
 0x178   :  { %1735 = vsyncpa [#allocation6], 1 }
 0x179   :  { %1737 = vsyncpa [#allocation6 + $0x1], 1 }

</bundles_post_ra>
